<compile_context>
chip_gen: v5e
topology: v5e:2x2
jax: 0.10.0
libtpu: 0.0.40
codegen_flags: <defaults>
</compile_context>

<pallas_src>
import math

import jax
import jax.numpy as jnp
from jax.experimental import pallas as pl
from jax.experimental.pallas import tpu as pltpu

HP = 128     # hidden dim padded to one full lane width
LANES = 128  # TPU lane width


def _round_up(x, m=8):
    return ((x + m - 1) // m) * m


def slab_layout(input_dim, hp=HP):
    """Row offsets (8-aligned sections) of the packed parameter slab."""
    r_w1 = 0                       # [input_dim, hp] : fc1 weight (x @ W form)
    r_b1 = _round_up(input_dim)    # [1, hp]         : fc1 bias row
    r_w2 = r_b1 + 8                # [hp, hp]        : fc2 weight
    r_b2 = r_w2 + hp               # [1, hp]         : fc2 bias row
    r_w3 = r_b2 + 8                # [1, hp]         : output weight row
    r_b3 = r_w3 + 8                # [1, 1]          : output bias scalar
    total = r_b3 + 8
    return r_w1, r_b1, r_w2, r_b2, r_w3, r_b3, total


def pack_params(params, input_dim, hidden_dim, hp=HP):
    """Pack PyTorch-layout params (w:[out,in], b:[out]) into one [R, 128] f32 slab."""
    w1, b1, w2, b2, w3, b3 = params
    # Fail loudly instead of silently truncating (per review).
    assert hidden_dim <= hp, f"hidden_dim={hidden_dim} must be <= {hp}"
    assert w1.shape == (hidden_dim, input_dim) and b1.shape == (hidden_dim,)
    assert w2.shape == (hidden_dim, hidden_dim) and b2.shape == (hidden_dim,)
    assert w3.shape == (1, hidden_dim) and b3.shape == (1,)

    r_w1, r_b1, r_w2, r_b2, r_w3, r_b3, total = slab_layout(input_dim, hp)
    slab = jnp.zeros((total, hp), jnp.float32)
    slab = slab.at[r_w1:r_w1 + input_dim, :hidden_dim].set(w1.T)   # x @ W1.T form
    slab = slab.at[r_b1, :hidden_dim].set(b1)
    slab = slab.at[r_w2:r_w2 + hidden_dim, :hidden_dim].set(w2.T)
    slab = slab.at[r_b2, :hidden_dim].set(b2)
    slab = slab.at[r_w3, :hidden_dim].set(w3[0])
    slab = slab.at[r_b3, 0].set(b3[0])
    return slab


def choose_states_per_step(num_stations, target_rows=256):
    """Smallest S such that S*num_stations is a multiple of 128 and >= target_rows."""
    base = LANES // math.gcd(LANES, num_stations)
    s = base
    while s * num_stations < target_rows:
        s += base
    return s


def build_policy_fns(num_stations, input_dim, states_per_step=None, target_rows=256):
    ns = num_stations
    S = states_per_step or choose_states_per_step(ns, target_rows)
    assert (S * ns) % LANES == 0, "states_per_step * num_stations must be a multiple of 128"
    M = S * ns                    # score-net rows per grid step (MXU M dimension)
    rows_out = M // LANES         # packed 128-lane output rows per grid step
    r_w1, r_b1, r_w2, r_b2, r_w3, r_b3, total = slab_layout(input_dim)

    def kernel(x_ref, p_ref, out_ref):
        x = x_ref[...]                                        # [M, D]

        # fc1 + tanh : [M, HP]   (padded hidden lanes stay exactly 0: tanh(0)=0)
        w1 = p_ref[r_w1:r_w1 + input_dim, :]                  # [D, HP]
        b1 = p_ref[r_b1:r_b1 + 1, :]                          # [1, HP]
        h1 = jnp.tanh(jnp.dot(x, w1, preferred_element_type=jnp.float32) + b1)

        # fc2 + tanh : [M, HP]
        w2 = p_ref[r_w2:r_w2 + HP, :]                         # [HP, HP]
        b2 = p_ref[r_b2:r_b2 + 1, :]                          # [1, HP]
        h2 = jnp.tanh(jnp.dot(h1, w2, preferred_element_type=jnp.float32) + b2)

        # Output head off the MXU: VPU multiply + XLU lane reduce (review item).
        w3 = p_ref[r_w3:r_w3 + 1, :]                          # [1, HP]
        b3 = p_ref[r_b3:r_b3 + 1, 0:1]                        # [1, 1]
        scores = jnp.sum(h2 * w3, axis=-1, keepdims=True) + b3  # [M, 1]

        # Per-state softmax: stations along lanes.
        scores = scores.reshape(S, ns)                        # [S, ns]
        m = jnp.max(scores, axis=-1, keepdims=True)
        e = jnp.exp(scores - m)
        denom = jnp.sum(e, axis=-1, keepdims=True)
        # approx=True would use the EUP vrcp slot (free) at ~1e-3 accuracy cost.
        probs = e * pl.reciprocal(denom, approx=False)

        # Lane-dense packed store: [S, ns] -> [rows_out, 128] (no masked vst).
        out_ref[...] = probs.reshape(1, rows_out, LANES)

    def _pallas_forward(x_flat, slab, num_steps):
        return pl.pallas_call(
            kernel,
            out_shape=jax.ShapeDtypeStruct((num_steps, rows_out, LANES), jnp.float32),
            grid_spec=pltpu.PrefetchScalarGridSpec(
                num_scalar_prefetch=0,
                grid=(num_steps,),
                in_specs=[
                    pl.BlockSpec((M, input_dim), lambda b: (b, 0)),
                    # Constant block index -> param slab DMA'd once, resident in VMEM.
                    pl.BlockSpec((total, HP), lambda b: (0, 0)),
                ],
                out_specs=pl.BlockSpec((1, rows_out, LANES), lambda b: (b, 0, 0)),
            ),
            compiler_params=pltpu.CompilerParams(
                dimension_semantics=("parallel",)),   # 2x on v7x's two TCs
        )(x_flat, slab)

    def _forward_batched(states, slab):
        # states: [B, num_stations, input_dim] -> probs [B, num_stations]
        B = states.shape[0]
        num_steps = -(-B // S)
        b_pad = num_steps * S
        x = states.reshape(B * ns, input_dim).astype(jnp.float32)
        if b_pad != B:
            # Zero-padded dummy states: finite math, discarded after the slice.
            x = jnp.pad(x, ((0, (b_pad - B) * ns), (0, 0)))
        out = _pallas_forward(x, slab, num_steps)      # [steps, rows_out, 128]
        return out.reshape(b_pad, ns)[:B]

    forward_batched = jax.jit(_forward_batched)
    # Module semantics: state [num_stations, input_dim] -> probs [num_stations]
    forward = jax.jit(lambda state, slab: _forward_batched(state[None], slab)[0])
    return forward, forward_batched


def init_params(key, input_dim, hidden_dim=20):
    """PyTorch nn.Linear default init, PyTorch layout: w [out, in], b [out]."""
    ks = jax.random.split(key, 6)

    def linear(kw, kb, fan_in, fan_out):
        bound = 1.0 / jnp.sqrt(float(fan_in))
        w = jax.random.uniform(kw, (fan_out, fan_in), jnp.float32, -bound, bound)
        b = jax.random.uniform(kb, (fan_out,), jnp.float32, -bound, bound)
        return w, b

    w1, b1 = linear(ks[0], ks[1], input_dim, hidden_dim)   # fc1
    w2, b2 = linear(ks[2], ks[3], hidden_dim, hidden_dim)  # fc2
    w3, b3 = linear(ks[4], ks[5], hidden_dim, 1)           # output
    return (w1, b1, w2, b2, w3, b3)


def policy_network_ref(state, params):
    """Pure-JAX reference of the PyTorch forward pass."""
    w1, b1, w2, b2, w3, b3 = params
    h = jnp.tanh(state @ w1.T + b1)
    h = jnp.tanh(h @ w2.T + b2)
    scores = (h @ w3.T + b3)[:, 0]
    return jax.nn.softmax(scores, axis=0)


if __name__ == "__main__":
    num_stations = 8
    input_dim = 16
    hidden_dim = 20
    batch = 48   # deliberately not a multiple of STATES_PER_STEP (exercises padding)

    key = jax.random.PRNGKey(0)
    k_state, k_batch, k_params = jax.random.split(key, 3)

    params = init_params(k_params, input_dim, hidden_dim)
    slab = pack_params(params, input_dim, hidden_dim)      # one-time host-side packing

    forward, forward_batched = build_policy_fns(num_stations, input_dim)

    # 1) Single-state forward (matches the PyTorch module's signature).
    state = jax.random.normal(k_state, (num_stations, input_dim), jnp.float32)
    probs = jax.block_until_ready(forward(state, slab))
    ref = policy_network_ref(state, params)
    assert probs.shape == (num_stations,)
    assert jnp.allclose(jnp.sum(probs), 1.0, atol=1e-5)
    assert jnp.allclose(probs, ref, atol=1e-5, rtol=1e-5)

    # 2) Batched rollout path: many states through the grid, slab resident in VMEM.
    states = jax.random.normal(k_batch, (batch, num_stations, input_dim), jnp.float32)
    probs_b = jax.block_until_ready(forward_batched(states, slab))
    ref_b = jax.vmap(lambda s: policy_network_ref(s, params))(states)
    assert probs_b.shape == (batch, num_stations)
    assert jnp.allclose(jnp.sum(probs_b, axis=-1), 1.0, atol=1e-5)
    assert jnp.allclose(probs_b, ref_b, atol=1e-5, rtol=1e-5)

    print("KERNEL_OK")
</pallas_src>

<mosaic_0001>
module attributes {stable_mosaic.version = 11 : i64} {
  func.func @kernel(%arg0: i32, %arg1: memref<256x16xf32, #tpu.memory_space<vmem>>, %arg2: memref<176x128xf32, #tpu.memory_space<vmem>>, %arg3: memref<1x2x128xf32, #tpu.memory_space<vmem>>) attributes {dimension_semantics = [#tpu.dimension_semantics<parallel>], iteration_bounds = array<i64: 1>, scalar_prefetch = 0 : i64, scratch_operands = 0 : i64, tpu.core_type = #tpu.core_type<tc>, window_params = [{transform_indices = @transform_0, window_bounds = array<i64: 256, 16>}, {pipeline_mode = #tpu.pipeline_mode<synchronous>, transform_indices = @transform_1, window_bounds = array<i64: 176, 128>}, {transform_indices = @transform_2, window_bounds = array<i64: 1, 2, 128>}]} {
    %c0 = arith.constant 0 : index
    %c0_0 = arith.constant 0 : index
    %0 = vector.load %arg1[%c0, %c0_0] : memref<256x16xf32, #tpu.memory_space<vmem>>, vector<256x16xf32>
    %c0_1 = arith.constant 0 : index
    %c0_2 = arith.constant 0 : index
    %1 = vector.load %arg2[%c0_1, %c0_2] : memref<176x128xf32, #tpu.memory_space<vmem>>, vector<16x128xf32>
    %c16 = arith.constant 16 : index
    %c0_3 = arith.constant 0 : index
    %2 = vector.load %arg2[%c16, %c0_3] : memref<176x128xf32, #tpu.memory_space<vmem>>, vector<1x128xf32>
    %cst = arith.constant dense<0.000000e+00> : vector<256x128xf32>
    %3 = tpu.matmul %0, %1, %cst {dimension_numbers = #tpu.dot_dimension_numbers<[1], [0], [0], [1], [0, 0, 1, 1], [], []>} : vector<256x16xf32>, vector<16x128xf32>, vector<256x128xf32> -> vector<256x128xf32>
    %4 = vector.broadcast %2 : vector<1x128xf32> to vector<256x128xf32>
    %5 = arith.addf %3, %4 : vector<256x128xf32>
    %6 = math.tanh %5 : vector<256x128xf32>
    %c24 = arith.constant 24 : index
    %c0_4 = arith.constant 0 : index
    %7 = vector.load %arg2[%c24, %c0_4] : memref<176x128xf32, #tpu.memory_space<vmem>>, vector<128x128xf32>
    %c152 = arith.constant 152 : index
    %c0_5 = arith.constant 0 : index
    %8 = vector.load %arg2[%c152, %c0_5] : memref<176x128xf32, #tpu.memory_space<vmem>>, vector<1x128xf32>
    %cst_6 = arith.constant dense<0.000000e+00> : vector<256x128xf32>
    %9 = tpu.matmul %6, %7, %cst_6 {dimension_numbers = #tpu.dot_dimension_numbers<[1], [0], [0], [1], [0, 0, 1, 1], [], []>} : vector<256x128xf32>, vector<128x128xf32>, vector<256x128xf32> -> vector<256x128xf32>
    %10 = vector.broadcast %8 : vector<1x128xf32> to vector<256x128xf32>
    %11 = arith.addf %9, %10 : vector<256x128xf32>
    %12 = math.tanh %11 : vector<256x128xf32>
    %c160 = arith.constant 160 : index
    %c0_7 = arith.constant 0 : index
    %13 = vector.load %arg2[%c160, %c0_7] : memref<176x128xf32, #tpu.memory_space<vmem>>, vector<1x128xf32>
    %c168 = arith.constant 168 : index
    %c0_8 = arith.constant 0 : index
    %14 = vector.load %arg2[%c168, %c0_8] : memref<176x128xf32, #tpu.memory_space<vmem>>, vector<1x1xf32>
    %15 = vector.broadcast %13 : vector<1x128xf32> to vector<256x128xf32>
    %16 = arith.mulf %12, %15 : vector<256x128xf32>
    %cst_9 = arith.constant dense<0.000000e+00> : vector<256xf32>
    %17 = vector.multi_reduction <add>, %16, %cst_9 [1] : vector<256x128xf32> to vector<256xf32>
    %18 = vector.shape_cast %17 : vector<256xf32> to vector<256x1xf32>
    %19 = vector.broadcast %14 : vector<1x1xf32> to vector<256x1xf32>
    %20 = arith.addf %18, %19 : vector<256x1xf32>
    %21 = vector.shape_cast %20 : vector<256x1xf32> to vector<32x8xf32>
    %cst_10 = arith.constant dense<0xFF800000> : vector<32xf32>
    %22 = vector.multi_reduction <maximumf>, %21, %cst_10 [1] : vector<32x8xf32> to vector<32xf32>
    %23 = vector.shape_cast %22 : vector<32xf32> to vector<32x1xf32>
    %24 = vector.broadcast %23 : vector<32x1xf32> to vector<32x8xf32>
    %25 = arith.subf %21, %24 : vector<32x8xf32>
    %26 = math.exp %25 : vector<32x8xf32>
    %cst_11 = arith.constant dense<0.000000e+00> : vector<32xf32>
    %27 = vector.multi_reduction <add>, %26, %cst_11 [1] : vector<32x8xf32> to vector<32xf32>
    %28 = vector.shape_cast %27 : vector<32xf32> to vector<32x1xf32>
    %29 = tpu.reciprocal %28 : vector<32x1xf32> -> vector<32x1xf32>
    %30 = vector.broadcast %29 : vector<32x1xf32> to vector<32x8xf32>
    %31 = arith.mulf %26, %30 : vector<32x8xf32>
    %32 = vector.shape_cast %31 : vector<32x8xf32> to vector<1x2x128xf32>
    %c0_12 = arith.constant 0 : index
    %c0_13 = arith.constant 0 : index
    %c0_14 = arith.constant 0 : index
    %33 = vector.load %arg3[%c0_12, %c0_13, %c0_14] : memref<1x2x128xf32, #tpu.memory_space<vmem>>, vector<1x2x128xf32>
    tpu.vector_store %arg3[%c0_12, %c0_13, %c0_14], %32 {strides = array<i32>} : memref<1x2x128xf32, #tpu.memory_space<vmem>>, vector<1x2x128xf32>,
    return
  }
  func.func @transform_0(%arg0: i32) -> (i32, i32) {
    %c0_i32 = arith.constant 0 : i32
    %c0_i32_0 = arith.constant 0 : i32
    return %arg0, %c0_i32 : i32, i32
  }
  func.func @transform_1(%arg0: i32) -> (i32, i32) {
    %c0_i32 = arith.constant 0 : i32
    %c0_i32_0 = arith.constant 0 : i32
    %c0_i32_1 = arith.constant 0 : i32
    return %c0_i32, %c0_i32_0 : i32, i32
  }
  func.func @transform_2(%arg0: i32) -> (i32, i32, i32) {
    %c0_i32 = arith.constant 0 : i32
    %c0_i32_0 = arith.constant 0 : i32
    %c0_i32_1 = arith.constant 0 : i32
    return %arg0, %c0_i32, %c0_i32_0 : i32, i32, i32
  }
}

</mosaic_0001>

<bundles_post_ra>
// kernel: _lambda_.1
= control target key start
LH: loop header
LB: loop body
LE: loop exit
PB: predicated region body
PF: predicated region fallthrough
CT: control target
= control target key end

     0   :  { %vm47_vm0 = vcmask 130048   ;;  %vm746_vm1 = vcmask 1041409   ;;  %vm748_vm2 = vcmask 1042434   ;;  %vm750_vm3 = vcmask 1043459   ;;  %s2729_s1 = inlined_call_operand.vmem [shape: f32[176,128], index: 1, kind: input, shape index: {}]   ;;  %s2730_s0 = inlined_call_operand.vmem [shape: f32[256,16], index: 0, kind: input, shape index: {}]   ;;  %s2731_s2 = inlined_call_operand.vmem [shape: f32[1,2,128], index: 2, kind: output, shape index: {}]  }
   0x1   :  { %v44_v0 = vld [vmem:[%s2729_s1 + $0x8] sm:$0xff]  ;;  %v43_v1 = vld [vmem:[%s2729_s1] sm:$0xff]  ;;  %v29_v3 = vld [vmem:[%s2730_s0 + $0x90] sm:$0xff]  ;;  %vm752_vm4 = vcmask 1044484   ;;  %vm754_vm5 = vcmask 1045509   ;;  %vm756_vm6 = vcmask 1046534  }
   0x2   :  { %158 = vmatpush.msra.mxu0 %v44_v0  ;;  %1581 = vmatpush.msra.mxu3 %v44_v0  ;;  %v11_v2 = vld [vmem:[%s2730_s0] sm:$0xff]  ;;  %v12_v4 = vld [vmem:[%s2730_s0 + $0x8] sm:$0xff]  ;;  %v30_v5 = vld [vmem:[%s2730_s0 + $0x98] sm:$0xff]  ;;  %vm758_vm7 = vcmask 1047559   ;;  %vm785_vm8 = vcmask 64512  }
   0x3   :  { %v13_v6 = vld [vmem:[%s2730_s0 + $0x10] sm:$0xff]  ;;  %v31_v7 = vld [vmem:[%s2730_s0 + $0xa0] sm:$0xff]  ;;  %v14_v8 = vld [vmem:[%s2730_s0 + $0x18] sm:$0xff] }
   0x4   :  { %159 = vmatpush.msra.mxu0 %v43_v1  ;;  %1582 = vmatpush.msra.mxu3 %v43_v1  ;;  %v32_v9 = vld [vmem:[%s2730_s0 + $0xa8] sm:$0xff]  ;;  %v15_v10 = vld [vmem:[%s2730_s0 + $0x20] sm:$0xff]  ;;  %v33_v11 = vld [vmem:[%s2730_s0 + $0xb0] sm:$0xff] }
   0x5   :  { %1549 = vmatmul.msk.f32.vlgmr.msra.gmra.mxu0 %vm47_vm0, %v11_v2  ;;  %1567 = vmatmul.msk.f32.vlgmr.msra.gmra.mxu3 %vm47_vm0, %v29_v3  ;;  %v16_v12 = vld [vmem:[%s2730_s0 + $0x28] sm:$0xff]  ;;  %v34_v13 = vld [vmem:[%s2730_s0 + $0xb8] sm:$0xff]  ;;  %v17_v14 = vld [vmem:[%s2730_s0 + $0x30] sm:$0xff] }
   0x6   :  { %v35_v15 = vld [vmem:[%s2730_s0 + $0xc0] sm:$0xff]  ;;  %v18_v16 = vld [vmem:[%s2730_s0 + $0x38] sm:$0xff]  ;;  %v36_v17 = vld [vmem:[%s2730_s0 + $0xc8] sm:$0xff] }
   0x7   :  { %v19_v18 = vld [vmem:[%s2730_s0 + $0x40] sm:$0xff]  ;;  %v37_v19 = vld [vmem:[%s2730_s0 + $0xd0] sm:$0xff]  ;;  %v20_v20 = vld [vmem:[%s2730_s0 + $0x48] sm:$0xff] }
   0x8   :  { %v38_v21 = vld [vmem:[%s2730_s0 + $0xd8] sm:$0xff]  ;;  %v304_v22 = vld [vmem:[%s2729_s1 + $0x90] sm:$0xff]  ;;  %v303_v23 = vld [vmem:[%s2729_s1 + $0x88] sm:$0xff] }
   0x9   :  { %307 = vmatpush.msra.mxu1 %v304_v22  ;;  %1584 = vmatpush.msrb.mxu3 %v304_v22  ;;  %v302_v24 = vld [vmem:[%s2729_s1 + $0x80] sm:$0xff]  ;;  %v301_v25 = vld [vmem:[%s2729_s1 + $0x78] sm:$0xff]  ;;  %v21_v26 = vld [vmem:[%s2730_s0 + $0x50] sm:$0xff] }
   0xa   :  { %1583 = vmatpush.msra.mxu2 %v304_v22  ;;  %v39_v27 = vld [vmem:[%s2730_s0 + $0xe0] sm:$0xff]  ;;  %v300_v28 = vld [vmem:[%s2729_s1 + $0x70] sm:$0xff]  ;;  %v299_v29 = vld [vmem:[%s2729_s1 + $0x68] sm:$0xff] }
   0xb   :  { %308 = vmatpush.msra.mxu1 %v303_v23  ;;  %1586 = vmatpush.msrb.mxu3 %v303_v23  ;;  %v298_v30 = vld [vmem:[%s2729_s1 + $0x60] sm:$0xff]  ;;  %v297_v31 = vld [vmem:[%s2729_s1 + $0x58] sm:$0xff]  ;;  %v40_v33 = vld [vmem:[%s2730_s0 + $0xe8] sm:$0xff] }
   0xc   :  { %1585 = vmatpush.msra.mxu2 %v303_v23  ;;  %v22_v32 = vld [vmem:[%s2730_s0 + $0x58] sm:$0xff]  ;;  %v296_v34 = vld [vmem:[%s2729_s1 + $0x50] sm:$0xff]  ;;  %v295_v35 = vld [vmem:[%s2729_s1 + $0x48] sm:$0xff] }
   0xd   :  { %1550 = vmatmul.msk.f32.gmra.mxu0 %vm47_vm0, %v12_v4  ;;  %1568 = vmatmul.msk.f32.gmra.mxu3 %vm47_vm0, %v30_v5  ;;  %v294_v36 = vld [vmem:[%s2729_s1 + $0x40] sm:$0xff]  ;;  %v41_v38 = vld [vmem:[%s2730_s0 + $0xf0] sm:$0xff]  ;;  %v293_v39 = vld [vmem:[%s2729_s1 + $0x38] sm:$0xff] }
   0xe   :  { %309 = vmatpush.msra.mxu1 %v302_v24  ;;  %1588 = vmatpush.msrb.mxu3 %v302_v24  ;;  %v23_v37 = vld [vmem:[%s2730_s0 + $0x60] sm:$0xff]  ;;  %v292_v40 = vld [vmem:[%s2729_s1 + $0x30] sm:$0xff]  ;;  %v291_v41 = vld [vmem:[%s2729_s1 + $0x28] sm:$0xff] }
   0xf   :  { %1587 = vmatpush.msra.mxu2 %v302_v24  ;;  %v290_v42 = vld [vmem:[%s2729_s1 + $0x20] sm:$0xff]  ;;  %v24_v43 = vld [vmem:[%s2730_s0 + $0x68] sm:$0xff]  ;;  %v42_v44 = vld [vmem:[%s2730_s0 + $0xf8] sm:$0xff] }
  0x10   :  { %310 = vmatpush.msra.mxu1 %v301_v25  ;;  %1590 = vmatpush.msrb.mxu3 %v301_v25  ;;  %v289_v45 = vld [vmem:[%s2729_s1 + $0x18] sm:$0xff]  ;;  %v25_v46 = vld [vmem:[%s2730_s0 + $0x70] sm:$0xff]  ;;  %v27_v50 = vld [vmem:[%s2730_s0 + $0x80] sm:$0xff] }
  0x11   :  { %1589 = vmatpush.msra.mxu2 %v301_v25  ;;  %v26_v47 = vld [vmem:[%s2730_s0 + $0x78] sm:$0xff]  ;;  %v2016_v48 = vld [vmem:[%s2729_s1 + $0x10] ss:$0 sm:$0xff]  ;;  %v28_v54 = vld [vmem:[%s2730_s0 + $0x88] sm:$0xff] }
  0x12   :  { %311 = vmatpush.msra.mxu1 %v300_v28  ;;  %1592 = vmatpush.msrb.mxu3 %v300_v28 }
  0x13   :  { %1591 = vmatpush.msra.mxu2 %v300_v28 }
  0x14   :  { %312 = vmatpush.msra.mxu1 %v299_v29  ;;  %1594 = vmatpush.msrb.mxu3 %v299_v29 }
  0x15   :  { %1551 = vmatmul.msk.f32.gmra.mxu0 %vm47_vm0, %v13_v6  ;;  %1569 = vmatmul.msk.f32.gmra.mxu3 %vm47_vm0, %v31_v7 }
  0x16   :  { %313 = vmatpush.msra.mxu1 %v298_v30  ;;  %1596 = vmatpush.msrb.mxu3 %v298_v30 }
  0x17   :  { %1593 = vmatpush.msra.mxu2 %v299_v29 }
  0x18   :  { %314 = vmatpush.msra.mxu1 %v297_v31  ;;  %1598 = vmatpush.msrb.mxu3 %v297_v31 }
  0x19   :  { %1595 = vmatpush.msra.mxu2 %v298_v30 }
  0x1a   :  { %315 = vmatpush.msra.mxu1 %v296_v34  ;;  %1600 = vmatpush.msrb.mxu3 %v296_v34 }
  0x1b   :  { %1597 = vmatpush.msra.mxu2 %v297_v31 }
  0x1c   :  { %316 = vmatpush.msra.mxu1 %v295_v35  ;;  %1602 = vmatpush.msrb.mxu3 %v295_v35 }
  0x1d   :  { %1552 = vmatmul.msk.f32.gmra.mxu0 %vm47_vm0, %v14_v8  ;;  %1570 = vmatmul.msk.f32.gmra.mxu3 %vm47_vm0, %v32_v9 }
  0x1e   :  { %317 = vmatpush.msra.mxu1 %v294_v36  ;;  %1604 = vmatpush.msrb.mxu3 %v294_v36 }
  0x1f   :  { %1599 = vmatpush.msra.mxu2 %v296_v34 }
  0x20   :  { %318 = vmatpush.msra.mxu1 %v293_v39  ;;  %1606 = vmatpush.msrb.mxu3 %v293_v39 }
  0x21   :  { %1601 = vmatpush.msra.mxu2 %v295_v35 }
  0x22   :  { %319 = vmatpush.msra.mxu1 %v292_v40  ;;  %1608 = vmatpush.msrb.mxu3 %v292_v40 }
  0x23   :  { %1603 = vmatpush.msra.mxu2 %v294_v36 }
  0x24   :  { %320 = vmatpush.msra.mxu1 %v291_v41  ;;  %1610 = vmatpush.msrb.mxu3 %v291_v41 }
  0x25   :  { %1553 = vmatmul.msk.f32.gmra.mxu0 %vm47_vm0, %v15_v10  ;;  %1571 = vmatmul.msk.f32.gmra.mxu3 %vm47_vm0, %v33_v11 }
  0x26   :  { %321 = vmatpush.msra.mxu1 %v290_v42  ;;  %1612 = vmatpush.msrb.mxu3 %v290_v42 }
  0x27   :  { %1605 = vmatpush.msra.mxu2 %v293_v39 }
  0x28   :  { %322 = vmatpush.msra.mxu1 %v289_v45  ;;  %1614 = vmatpush.msrb.mxu3 %v289_v45 }
  0x29   :  { %1607 = vmatpush.msra.mxu2 %v292_v40 }
  0x2b   :  { %1609 = vmatpush.msra.mxu2 %v291_v41 }
  0x2d   :  { %1554 = vmatmul.msk.f32.gmra.mxu0 %vm47_vm0, %v16_v12  ;;  %1572 = vmatmul.msk.f32.gmra.mxu3 %vm47_vm0, %v34_v13 }
  0x2e   :  { %1611 = vmatpush.msra.mxu2 %v290_v42 }
  0x30   :  { %1613 = vmatpush.msra.mxu2 %v289_v45 }
  0x35   :  { %1555 = vmatmul.msk.f32.gmra.mxu0 %vm47_vm0, %v17_v14  ;;  %1573 = vmatmul.msk.f32.gmra.mxu3 %vm47_vm0, %v35_v15 }
  0x3d   :  { %1556 = vmatmul.msk.f32.gmra.mxu0 %vm47_vm0, %v18_v16  ;;  %1574 = vmatmul.msk.f32.gmra.mxu3 %vm47_vm0, %v36_v17 }
  0x45   :  { %1557 = vmatmul.msk.f32.gmra.mxu0 %vm47_vm0, %v19_v18  ;;  %1575 = vmatmul.msk.f32.gmra.mxu3 %vm47_vm0, %v37_v19 }
  0x4d   :  { %1558 = vmatmul.msk.f32.gmra.mxu0 %vm47_vm0, %v20_v20  ;;  %1576 = vmatmul.msk.f32.gmra.mxu3 %vm47_vm0, %v38_v21 }
  0x55   :  { %1559 = vmatmul.msk.f32.gmra.mxu0 %vm47_vm0, %v21_v26  ;;  %1577 = vmatmul.msk.f32.gmra.mxu3 %vm47_vm0, %v39_v27 }
  0x5d   :  { %1560 = vmatmul.msk.f32.gmra.mxu0 %vm47_vm0, %v22_v32  ;;  %1578 = vmatmul.msk.f32.gmra.mxu3 %vm47_vm0, %v40_v33 }
  0x65   :  { %1561 = vmatmul.msk.f32.gmra.mxu0 %vm47_vm0, %v23_v37  ;;  %1579 = vmatmul.msk.f32.gmra.mxu3 %vm47_vm0, %v41_v38 }
  0x6d   :  { %1562 = vmatmul.msk.f32.gmra.mxu0 %vm47_vm0, %v24_v43  ;;  %1580 = vmatmul.msk.f32.gmra.mxu3 %vm47_vm0, %v42_v44 }
  0x75   :  { %1563 = vmatmul.msk.f32.gmra.mxu0 %vm47_vm0, %v25_v46 }
  0x7d   :  { %1564 = vmatmul.msk.f32.gmra.mxu0 %vm47_vm0, %v26_v47 }
  0x82   :  { %v161_v49 = vpop.f32.mrf.mxu0 }
  0x83   :  { %v162_v51 = vadd.f32 %v2016_v48, %v161_v49 }
  0x85   :  { %1623 = vtanh.f32 %v162_v51  ;;  %1565 = vmatmul.msk.f32.gmra.mxu0 %vm47_vm0, %v27_v50 }
  0x88   :  { %v2023_v52 = vpop.f32.mrf.mxu3 }
  0x8a   :  { %v164_v53 = vpop.f32.mrf.mxu0 }
  0x8b   :  { %v1624_v55 = vpop.eup %1623  ;;  %v165_v56 = vadd.f32 %v2016_v48, %v164_v53 }
  0x8c   :  { %323 = vmatmul.f32.vlgmr.msra.gmra.mxu1 %v1624_v55 }
  0x8d   :  { %1625 = vtanh.f32 %v165_v56  ;;  %1566 = vmatmul.msk.f32.gmra.mxu0 %vm47_vm0, %v28_v54 }
  0x90   :  { %v2030_v57 = vpop.f32.mrf.mxu3 }
  0x92   :  { %v167_v58 = vpop.f32.mrf.mxu0 }
  0x93   :  { %v1626_v59 = vpop.eup %1625  ;;  %v168_v60 = vadd.f32 %v2016_v48, %v167_v58  ;;  %v2072_v58 = vld [vmem:[%s2729_s1 + $0x98] ss:$0 sm:$0xff] }
  0x94   :  { %326 = vmatmul.f32.gmra.mxu1 %v1626_v59 }
  0x95   :  { %1627 = vtanh.f32 %v168_v60 }
  0x98   :  { %v2033_v61 = vpop.f32.mrf.mxu3 }
  0x9a   :  { %v170_v62 = vpop.f32.mrf.mxu0 }
  0x9b   :  { %v1628_v63 = vpop.eup %1627  ;;  %v171_v0 = vadd.f32 %v2016_v48, %v170_v62 }
  0x9c   :  { %329 = vmatmul.f32.gmra.mxu1 %v1628_v63 }
  0x9d   :  { %1629 = vtanh.f32 %v171_v0 }
  0xa0   :  { %v2036_v1 = vpop.f32.mrf.mxu3 }
  0xa2   :  { %v173_v2 = vpop.f32.mrf.mxu0 }
  0xa3   :  { %v1630_v3 = vpop.eup %1629  ;;  %v174_v4 = vadd.f32 %v2016_v48, %v173_v2  ;;  %v2079_v2 = vld [vmem:[%s2729_s1 + $0xa0] ss:$0 sm:$0xff] }
  0xa4   :  { %332 = vmatmul.f32.gmra.mxu1 %v1630_v3  ;;  %v216_v3 = vadd.f32 %v2016_v48, %v2023_v52 }
  0xa5   :  { %1631 = vtanh.f32 %v174_v4 }
  0xa8   :  { %v2039_v5 = vpop.f32.mrf.mxu3 }
  0xaa   :  { %v176_v6 = vpop.f32.mrf.mxu0 }
  0xab   :  { %v1632_v7 = vpop.eup %1631  ;;  %v177_v8 = vadd.f32 %v2016_v48, %v176_v6 }
  0xac   :  { %335 = vmatmul.f32.gmra.mxu1 %v1632_v7 }
  0xad   :  { %1633 = vtanh.f32 %v177_v8 }
  0xb0   :  { %v2042_v9 = vpop.f32.mrf.mxu3 }
  0xb2   :  { %v179_v10 = vpop.f32.mrf.mxu0 }
  0xb3   :  { %v1634_v11 = vpop.eup %1633  ;;  %v180_v12 = vadd.f32 %v2016_v48, %v179_v10 }
  0xb4   :  { %338 = vmatmul.f32.gmra.mxu1 %v1634_v11  ;;  %v219_v11 = vadd.f32 %v2016_v48, %v2030_v57 }
  0xb5   :  { %1635 = vtanh.f32 %v180_v12 }
  0xb8   :  { %v2045_v13 = vpop.f32.mrf.mxu3 }
  0xba   :  { %v182_v14 = vpop.f32.mrf.mxu0 }
  0xbb   :  { %v1636_v15 = vpop.eup %1635  ;;  %v183_v16 = vadd.f32 %v2016_v48, %v182_v14 }
  0xbc   :  { %341 = vmatmul.f32.gmra.mxu1 %v1636_v15 }
  0xbd   :  { %1637 = vtanh.f32 %v183_v16 }
  0xc0   :  { %v2048_v17 = vpop.f32.mrf.mxu3 }
  0xc2   :  { %v185_v18 = vpop.f32.mrf.mxu0 }
  0xc3   :  { %v1638_v19 = vpop.eup %1637  ;;  %v186_v20 = vadd.f32 %v2016_v48, %v185_v18  ;;  %v222_v18 = vadd.f32 %v2016_v48, %v2033_v61 }
  0xc4   :  { %344 = vmatmul.f32.gmra.mxu1 %v1638_v19 }
  0xc5   :  { %1639 = vtanh.f32 %v186_v20 }
  0xc8   :  { %v2051_v21 = vpop.f32.mrf.mxu3 }
  0xca   :  { %v188_v22 = vpop.f32.mrf.mxu0 }
  0xcb   :  { %v1640_v23 = vpop.eup %1639  ;;  %v189_v24 = vadd.f32 %v2016_v48, %v188_v22 }
  0xcc   :  { %347 = vmatmul.f32.gmra.mxu1 %v1640_v23 }
  0xcd   :  { %1641 = vtanh.f32 %v189_v24  ;;  %v225_v24 = vadd.f32 %v2016_v48, %v2036_v1 }
  0xd0   :  { %v2054_v25 = vpop.f32.mrf.mxu3 }
  0xd2   :  { %v191_v26 = vpop.f32.mrf.mxu0 }
  0xd3   :  { %v1642_v27 = vpop.eup %1641  ;;  %v192_v28 = vadd.f32 %v2016_v48, %v191_v26 }
  0xd4   :  { %350 = vmatmul.f32.gmra.mxu1 %v1642_v27 }
  0xd5   :  { %1643 = vtanh.f32 %v192_v28 }
  0xd8   :  { %v2057_v29 = vpop.f32.mrf.mxu3 }
  0xda   :  { %v194_v30 = vpop.f32.mrf.mxu0 }
  0xdb   :  { %v1644_v31 = vpop.eup %1643  ;;  %v195_v32 = vadd.f32 %v2016_v48, %v194_v30 }
  0xdc   :  { %353 = vmatmul.f32.gmra.mxu1 %v1644_v31  ;;  %v228_v31 = vadd.f32 %v2016_v48, %v2039_v5 }
  0xdd   :  { %1645 = vtanh.f32 %v195_v32 }
  0xe0   :  { %v2060_v33 = vpop.f32.mrf.mxu3 }
  0xe2   :  { %v197_v34 = vpop.f32.mrf.mxu0 }
  0xe3   :  { %v1646_v35 = vpop.eup %1645  ;;  %v198_v36 = vadd.f32 %v2016_v48, %v197_v34 }
  0xe4   :  { %356 = vmatmul.f32.gmra.mxu1 %v1646_v35 }
  0xe5   :  { %1647 = vtanh.f32 %v198_v36 }
  0xe8   :  { %v251_v37 = vpop.f32.mrf.mxu3 }
  0xe9   :  { %v252_v38 = vadd.f32 %v2016_v48, %v251_v37  ;;  %v231_v37 = vadd.f32 %v2016_v48, %v2042_v9 }
  0xea   :  { %v200_v39 = vpop.f32.mrf.mxu0 }
  0xeb   :  { %v1648_v40 = vpop.eup %1647  ;;  %v201_v41 = vadd.f32 %v2016_v48, %v200_v39  ;;  %1649 = vtanh.f32 %v252_v38 }
  0xec   :  { %359 = vmatmul.f32.gmra.mxu1 %v1648_v40 }
  0xed   :  { %1651 = vtanh.f32 %v201_v41 }
  0xf0   :  { %v254_v42 = vpop.f32.mrf.mxu3 }
  0xf1   :  { %v1650_v43 = vpop.eup %1649  ;;  %v255_v44 = vadd.f32 %v2016_v48, %v254_v42  ;;  %v234_v42 = vadd.f32 %v2016_v48, %v2045_v13 }
  0xf2   :  { %v203_v45 = vpop.f32.mrf.mxu0  ;;  %413 = vmatmul.f32.vlgmr.msrb.gmra.mxu3 %v1650_v43 }
  0xf3   :  { %v1652_v46 = vpop.eup %1651  ;;  %v204_v47 = vadd.f32 %v2016_v48, %v203_v45  ;;  %1653 = vtanh.f32 %v255_v44 }
  0xf4   :  { %362 = vmatmul.f32.gmra.mxu1 %v1652_v46 }
  0xf5   :  { %1655 = vtanh.f32 %v204_v47  ;;  %v237_v47 = vadd.f32 %v2016_v48, %v2048_v17 }
  0xf9   :  { %v1654_v49 = vpop.eup %1653 }
  0xfa   :  { %v206_v50 = vpop.f32.mrf.mxu0  ;;  %416 = vmatmul.f32.gmra.mxu3 %v1654_v49 }
  0xfb   :  { %v1656_v51 = vpop.eup %1655  ;;  %v207_v53 = vadd.f32 %v2016_v48, %v206_v50 }
  0xfc   :  { %365 = vmatmul.f32.gmra.mxu1 %v1656_v51 }
  0xfd   :  { %1657 = vtanh.f32 %v207_v53 }
 0x102   :  { %v209_v54 = vpop.f32.mrf.mxu0 }
 0x103   :  { %v1658_v55 = vpop.eup %1657  ;;  %v210_v56 = vadd.f32 %v2016_v48, %v209_v54  ;;  %v240_v54 = vadd.f32 %v2016_v48, %v2051_v21 }
 0x104   :  { %368 = vmatmul.f32.vlgmr.msra.gmra.mxu2 %v1658_v55 }
 0x105   :  { %1659 = vtanh.f32 %v210_v56 }
 0x109   :  { %v324_v59 = vpop.f32.mrf.mxu1 }
 0x10a   :  { %v325_v60 = vadd.f32 %v2072_v58, %v324_v59  ;;  %v212_v62 = vpop.f32.mrf.mxu0 }
 0x10b   :  { %v1660_v63 = vpop.eup %1659  ;;  %v213_v0 = vadd.f32 %v2016_v48, %v212_v62  ;;  %v243_v62 = vadd.f32 %v2016_v48, %v2054_v25 }
 0x10c   :  { %1661 = vtanh.f32 %v325_v60  ;;  %371 = vmatmul.f32.gmra.mxu2 %v1660_v63 }
 0x10d   :  { %1663 = vtanh.f32 %v213_v0 }
 0x111   :  { %v327_v4 = vpop.f32.mrf.mxu1 }
 0x112   :  { %v1662_v6 = vpop.eup %1661  ;;  %v328_v7 = vadd.f32 %v2072_v58, %v327_v4 }
 0x113   :  { %v1664_v8 = vpop.eup %1663  ;;  %v455_v10 = vmul.f32 %v1662_v6, %v2079_v2  ;;  %v246_v6 = vadd.f32 %v2016_v48, %v2057_v29 }
 0x114   :  { %1665 = vtanh.f32 %v328_v7  ;;  %374 = vmatmul.f32.gmra.mxu2 %v1664_v8 }
 0x115   :  { %1667 = vtanh.f32 %v216_v3  ;;  %487 = vadd.xlane.f32.xlu0 %v455_v10 }
 0x119   :  { %v330_v12 = vpop.f32.mrf.mxu1 }
 0x11a   :  { %v1666_v14 = vpop.eup %1665  ;;  %v331_v15 = vadd.f32 %v2072_v58, %v330_v12  ;;  %v249_v12 = vadd.f32 %v2016_v48, %v2060_v33 }
 0x11b   :  { %v1668_v16 = vpop.eup %1667  ;;  %v456_v52 = vmul.f32 %v1666_v14, %v2079_v2 }
 0x11c   :  { %1669 = vtanh.f32 %v331_v15  ;;  %377 = vmatmul.f32.gmra.mxu2 %v1668_v16 }
 0x11d   :  { %1671 = vtanh.f32 %v219_v11  ;;  %489 = vadd.xlane.f32.xlu0 %v456_v52 }
 0x121   :  { %v333_v19 = vpop.f32.mrf.mxu1 }
 0x122   :  { %v1670_v20 = vpop.eup %1669  ;;  %v334_v22 = vadd.f32 %v2072_v58, %v333_v19 }
 0x123   :  { %v1672_v23 = vpop.eup %1671  ;;  %v457_v57 = vmul.f32 %v1670_v20, %v2079_v2 }
 0x124   :  { %1673 = vtanh.f32 %v334_v22  ;;  %380 = vmatmul.f32.gmra.mxu2 %v1672_v23 }
 0x125   :  { %1675 = vtanh.f32 %v222_v18  ;;  %491 = vadd.xlane.f32.xlu1 %v457_v57 }
 0x129   :  { %v336_v26 = vpop.f32.mrf.mxu1 }
 0x12a   :  { %v1674_v27 = vpop.eup %1673  ;;  %v337_v28 = vadd.f32 %v2072_v58, %v336_v26 }
 0x12b   :  { %v1676_v30 = vpop.eup %1675  ;;  %v458_v61 = vmul.f32 %v1674_v27, %v2079_v2 }
 0x12c   :  { %1677 = vtanh.f32 %v337_v28  ;;  %383 = vmatmul.f32.gmra.mxu2 %v1676_v30  ;;  %v1823_v28 = vmov 0  }
 0x12d   :  { %1679 = vtanh.f32 %v225_v24  ;;  %493 = vadd.xlane.f32.xlu1 %v458_v61  ;;  %1616 = vset.pattern.permute.xlu2 %v1823_v28 }
 0x12e   :  { %1617 = vset.pattern.permute.xlu0 %v1823_v28  ;;  %1618 = vset.pattern.permute.xlu1 %v1823_v28 }
 0x131   :  { %v339_v32 = vpop.f32.mrf.mxu1 }
 0x132   :  { %v1678_v34 = vpop.eup %1677  ;;  %v340_v35 = vadd.f32 %v2072_v58, %v339_v32 }
 0x133   :  { %v1680_v36 = vpop.eup %1679  ;;  %v459_v1 = vmul.f32 %v1678_v34, %v2079_v2 }
 0x134   :  { %1681 = vtanh.f32 %v340_v35  ;;  %386 = vmatmul.f32.gmra.mxu2 %v1680_v36 }
 0x135   :  { %1683 = vtanh.f32 %v228_v31  ;;  %495 = vadd.xlane.f32.xlu2 %v459_v1 }
 0x139   :  { %v342_v38 = vpop.f32.mrf.mxu1 }
 0x13a   :  { %v1682_v39 = vpop.eup %1681  ;;  %v343_v40 = vadd.f32 %v2072_v58, %v342_v38 }
 0x13b   :  { %v1684_v41 = vpop.eup %1683  ;;  %v460_v5 = vmul.f32 %v1682_v39, %v2079_v2 }
 0x13c   :  { %1685 = vtanh.f32 %v343_v40  ;;  %389 = vmatmul.f32.gmra.mxu2 %v1684_v41 }
 0x13d   :  { %1687 = vtanh.f32 %v231_v37  ;;  %497 = vadd.xlane.f32.xlu2 %v460_v5 }
 0x141   :  { %v345_v43 = vpop.f32.mrf.mxu1 }
 0x142   :  { %v1686_v44 = vpop.eup %1685  ;;  %v346_v45 = vadd.f32 %v2072_v58, %v345_v43 }
 0x143   :  { %v1688_v46 = vpop.eup %1687  ;;  %v461_v9 = vmul.f32 %v1686_v44, %v2079_v2 }
 0x144   :  { %1689 = vtanh.f32 %v346_v45  ;;  %392 = vmatmul.f32.gmra.mxu2 %v1688_v46 }
 0x145   :  { %1691 = vtanh.f32 %v234_v42  ;;  %499 = vadd.xlane.f32.xlu0 %v461_v9  ;;  %v2144_v42 = vld [vmem:[%s2729_s1 + $0xa8] ss:$0 sm:$0xff] }
 0x149   :  { %v348_v49 = vpop.f32.mrf.mxu1 }
 0x14a   :  { %v1690_v50 = vpop.eup %1689  ;;  %v349_v51 = vadd.f32 %v2072_v58, %v348_v49 }
 0x14b   :  { %v1692_v53 = vpop.eup %1691  ;;  %v462_v13 = vmul.f32 %v1690_v50, %v2079_v2 }
 0x14c   :  { %1693 = vtanh.f32 %v349_v51  ;;  %395 = vmatmul.f32.gmra.mxu2 %v1692_v53 }
 0x14d   :  { %1695 = vtanh.f32 %v237_v47  ;;  %501 = vadd.xlane.f32.xlu1 %v462_v13 }
 0x151   :  { %v351_v55 = vpop.f32.mrf.mxu1 }
 0x152   :  { %v1694_v56 = vpop.eup %1693  ;;  %v352_v59 = vadd.f32 %v2072_v58, %v351_v55 }
 0x153   :  { %v1696_v60 = vpop.eup %1695  ;;  %v463_v17 = vmul.f32 %v1694_v56, %v2079_v2 }
 0x154   :  { %1697 = vtanh.f32 %v352_v59  ;;  %398 = vmatmul.f32.gmra.mxu2 %v1696_v60 }
 0x155   :  { %1699 = vtanh.f32 %v240_v54  ;;  %503 = vadd.xlane.f32.xlu2 %v463_v17 }
 0x159   :  { %v354_v63 = vpop.f32.mrf.mxu1 }
 0x15a   :  { %v1698_v0 = vpop.eup %1697  ;;  %v355_v3 = vadd.f32 %v2072_v58, %v354_v63 }
 0x15b   :  { %v1700_v4 = vpop.eup %1699  ;;  %v464_v21 = vmul.f32 %v1698_v0, %v2079_v2 }
 0x15c   :  { %1701 = vtanh.f32 %v355_v3  ;;  %401 = vmatmul.f32.gmra.mxu2 %v1700_v4 }
 0x15d   :  { %1703 = vtanh.f32 %v243_v62  ;;  %505 = vadd.xlane.f32.xlu0 %v464_v21 }
 0x161   :  { %v357_v7 = vpop.f32.mrf.mxu1 }
 0x162   :  { %v1702_v8 = vpop.eup %1701  ;;  %v358_v10 = vadd.f32 %v2072_v58, %v357_v7 }
 0x163   :  { %v1704_v11 = vpop.eup %1703  ;;  %v465_v25 = vmul.f32 %v1702_v8, %v2079_v2 }
 0x164   :  { %1705 = vtanh.f32 %v358_v10  ;;  %404 = vmatmul.f32.gmra.mxu2 %v1704_v11 }
 0x165   :  { %1707 = vtanh.f32 %v246_v6  ;;  %507 = vadd.xlane.f32.xlu1 %v465_v25 }
 0x169   :  { %v360_v14 = vpop.f32.mrf.mxu1 }
 0x16a   :  { %v1706_v15 = vpop.eup %1705  ;;  %v361_v16 = vadd.f32 %v2072_v58, %v360_v14 }
 0x16b   :  { %v1708_v52 = vpop.eup %1707  ;;  %v466_v29 = vmul.f32 %v1706_v15, %v2079_v2 }
 0x16c   :  { %1709 = vtanh.f32 %v361_v16  ;;  %407 = vmatmul.f32.gmra.mxu2 %v1708_v52 }
 0x16d   :  { %1711 = vtanh.f32 %v249_v12  ;;  %509 = vadd.xlane.f32.xlu2 %v466_v29 }
 0x171   :  { %v363_v18 = vpop.f32.mrf.mxu1 }
 0x172   :  { %v1710_v19 = vpop.eup %1709  ;;  %v364_v20 = vadd.f32 %v2072_v58, %v363_v18 }
 0x173   :  { %v1712_v22 = vpop.eup %1711  ;;  %v467_v23 = vmul.f32 %v1710_v19, %v2079_v2 }
 0x174   :  { %1713 = vtanh.f32 %v364_v20  ;;  %410 = vmatmul.f32.gmra.mxu2 %v1712_v22 }
 0x175   :  { %511 = vadd.xlane.f32.xlu0 %v467_v23  ;;  %v414_v48 = vpop.f32.mrf.mxu3 }
 0x176   :  { %v415_v33 = vadd.f32 %v2072_v58, %v414_v48 }
 0x178   :  { %1715 = vtanh.f32 %v415_v33 }
 0x179   :  { %v366_v57 = vpop.f32.mrf.mxu1 }
 0x17a   :  { %v1714_v24 = vpop.eup %1713  ;;  %v367_v26 = vadd.f32 %v2072_v58, %v366_v57 }
 0x17b   :  { %v468_v27 = vmul.f32 %v1714_v24, %v2079_v2 }
 0x17c   :  { %1717 = vtanh.f32 %v367_v26 }
 0x17d   :  { %513 = vadd.xlane.f32.xlu1 %v468_v27  ;;  %v417_v30 = vpop.f32.mrf.mxu3 }
 0x17e   :  { %v1716_v61 = vpop.eup %1715  ;;  %v418_v31 = vadd.f32 %v2072_v58, %v417_v30 }
 0x17f   :  { %v485_v32 = vmul.f32 %v1716_v61, %v2079_v2 }
 0x180   :  { %1719 = vtanh.f32 %v418_v31 }
 0x181   :  { %547 = vadd.xlane.f32.xlu0 %v485_v32 }
 0x182   :  { %v1718_v34 = vpop.eup %1717 }
 0x183   :  { %v469_v35 = vmul.f32 %v1718_v34, %v2079_v2 }
 0x185   :  { %515 = vadd.xlane.f32.xlu2 %v469_v35 }
 0x186   :  { %v1720_v36 = vpop.eup %1719 }
 0x187   :  { %v369_v1 = vpop.f32.mrf.mxu2  ;;  %v486_v37 = vmul.f32 %v1720_v36, %v2079_v2 }
 0x188   :  { %v370_v38 = vadd.f32 %v2072_v58, %v369_v1  ;;  %v488_v44 = vpop.xlane.xlu0 %487 }
 0x189   :  { %549 = vadd.xlane.f32.xlu1 %v486_v37  ;;  %v2148_v46 = vadd.f32 %v2144_v42, %v488_v44 }
 0x18a   :  { %1721 = vtanh.f32 %v370_v38 }
 0x18f   :  { %v372_v39 = vpop.f32.mrf.mxu2 }
 0x190   :  { %v1722_v40 = vpop.eup %1721  ;;  %v373_v41 = vadd.f32 %v2072_v58, %v372_v39  ;;  %v490_v47 = vpop.xlane.xlu0 %489 }
 0x191   :  { %v470_v5 = vmul.f32 %v1722_v40, %v2079_v2  ;;  %v2152_v49 = vadd.f32 %v2144_v42, %v490_v47 }
 0x192   :  { %1723 = vtanh.f32 %v373_v41 }
 0x193   :  { %517 = vadd.xlane.f32.xlu0 %v470_v5 }
 0x197   :  { %v375_v9 = vpop.f32.mrf.mxu2 }
 0x198   :  { %v1724_v43 = vpop.eup %1723  ;;  %v492_v51 = vpop.xlane.xlu1 %491  ;;  %v376_v54 = vadd.f32 %v2072_v58, %v375_v9 }
 0x199   :  { %v471_v45 = vmul.f32 %v1724_v43, %v2079_v2  ;;  %v2156_v53 = vadd.f32 %v2144_v42, %v492_v51 }
 0x19a   :  { %1725 = vtanh.f32 %v376_v54 }
 0x19b   :  { %519 = vadd.xlane.f32.xlu1 %v471_v45 }
 0x19d   :  { %617 = vperm.xlu2 %1616, %v2148_v46  }
 0x19f   :  { %v378_v50 = vpop.f32.mrf.mxu2 }
 0x1a0   :  { %v1726_v56 = vpop.eup %1725  ;;  %v379_v59 = vadd.f32 %v2072_v58, %v378_v50  ;;  %v494_v8 = vpop.xlane.xlu1 %493 }
 0x1a1   :  { %v472_v60 = vmul.f32 %v1726_v56, %v2079_v2  ;;  %v2167_v10 = vadd.f32 %v2144_v42, %v494_v8 }
 0x1a2   :  { %1727 = vtanh.f32 %v379_v59 }
 0x1a7   :  { %620 = vperm.xlu0 %1617, %v2152_v49   ;;  %v381_v13 = vpop.f32.mrf.mxu2 }
 0x1a8   :  { %v1728_v63 = vpop.eup %1727  ;;  %v382_v0 = vadd.f32 %v2072_v58, %v381_v13  ;;  %v496_v21 = vpop.xlane.xlu2 %495 }
 0x1a9   :  { %v473_v3 = vmul.f32 %v1728_v63, %v2079_v2  ;;  %v2172_v12 = vadd.f32 %v2144_v42, %v496_v21 }
 0x1af   :  { %v384_v55 = vpop.f32.mrf.mxu2 }
 0x1b0   :  { %v498_v25 = vpop.xlane.xlu2 %497  ;;  %v385_v20 = vadd.f32 %v2072_v58, %v384_v55 }
 0x1b1   :  { %v2180_v52 = vadd.f32 %v2144_v42, %v498_v25 }
 0x1b4   :  { %623 = vperm.xlu1 %1618, %v2156_v53  }
 0x1b7   :  { %v387_v17 = vpop.f32.mrf.mxu2 }
 0x1b8   :  { %v388_v62 = vadd.f32 %v2072_v58, %v387_v17  ;;  %v500_v27 = vpop.xlane.xlu0 %499 }
 0x1b9   :  { %v2193_v30 = vadd.f32 %v2144_v42, %v500_v27 }
 0x1ba   :  { %1729 = vtanh.f32 %v388_v62 }
 0x1bb   :  { %1731 = vtanh.f32 %v382_v0 }
 0x1bc   :  { %1733 = vtanh.f32 %v385_v20 }
 0x1bf   :  { %v390_v16 = vpop.f32.mrf.mxu2 }
 0x1c0   :  { %v1730_v4 = vpop.eup %1729  ;;  %v502_v29 = vpop.xlane.xlu1 %501  ;;  %v391_v26 = vadd.f32 %v2072_v58, %v390_v16 }
 0x1c1   :  { %v476_v6 = vmul.f32 %v1730_v4, %v2079_v2  ;;  %v1732_v7 = vpop.eup %1731  ;;  %v2184_v19 = vadd.f32 %v2144_v42, %v502_v29  ;;  %v712_v29 = vlaneseq }
 0x1c2   :  { %v474_v11 = vmul.f32 %v1732_v7, %v2079_v2  ;;  %v1734_v48 = vpop.eup %1733 }
 0x1c3   :  { %v475_v33 = vmul.f32 %v1734_v48, %v2079_v2 }
 0x1c6   :  { %521 = vadd.xlane.f32.xlu2 %v472_v60 }
 0x1c7   :  { %v393_v18 = vpop.f32.mrf.mxu2 }
 0x1c8   :  { %v504_v14 = vpop.xlane.xlu2 %503  ;;  %v394_v37 = vadd.f32 %v2072_v58, %v393_v18 }
 0x1c9   :  { %v2176_v15 = vadd.f32 %v2144_v42, %v504_v14 }
 0x1cf   :  { %v396_v22 = vpop.f32.mrf.mxu2 }
 0x1d0   :  { %v397_v23 = vadd.f32 %v2072_v58, %v396_v22  ;;  %v506_v47 = vpop.xlane.xlu0 %505 }
 0x1d1   :  { %523 = vadd.xlane.f32.xlu0 %v473_v3  ;;  %v2211_v50 = vadd.f32 %v2144_v42, %v506_v47 }
 0x1d2   :  { %1735 = vtanh.f32 %v397_v23  ;;  %v2241_v23 = vand.u32 127, %v712_v29 }
 0x1d3   :  { %1737 = vtanh.f32 %v391_v26 }
 0x1d4   :  { %1739 = vtanh.f32 %v394_v37 }
 0x1d7   :  { %v399_v34 = vpop.f32.mrf.mxu2 }
 0x1d8   :  { %v1736_v57 = vpop.eup %1735  ;;  %v508_v36 = vpop.xlane.xlu1 %507  ;;  %v400_v45 = vadd.f32 %v2072_v58, %v399_v34 }
 0x1d9   :  { %529 = vadd.xlane.f32.xlu0 %v476_v6  ;;  %v479_v24 = vmul.f32 %v1736_v57, %v2079_v2  ;;  %v1738_v28 = vpop.eup %1737  ;;  %v2202_v1 = vadd.f32 %v2144_v42, %v508_v36 }
 0x1da   :  { %v477_v31 = vmul.f32 %v1738_v28, %v2079_v2  ;;  %v1740_v40 = vpop.eup %1739 }
 0x1db   :  { %v478_v41 = vmul.f32 %v1740_v40, %v2079_v2 }
 0x1de   :  { %525 = vadd.xlane.f32.xlu1 %v474_v11  ;;  %626 = vperm.xlu2 %1616, %v2167_v10  }
 0x1df   :  { %v402_v35 = vpop.f32.mrf.mxu2 }
 0x1e0   :  { %v510_v61 = vpop.xlane.xlu2 %509  ;;  %v403_v0 = vadd.f32 %v2072_v58, %v402_v35 }
 0x1e1   :  { %v2198_v32 = vadd.f32 %v2144_v42, %v510_v61 }
 0x1e6   :  { %629 = vperm.xlu2 %1616, %v2172_v12  }
 0x1e7   :  { %v405_v38 = vpop.f32.mrf.mxu2 }
 0x1e8   :  { %v406_v39 = vadd.f32 %v2072_v58, %v405_v38  ;;  %v512_v63 = vpop.xlane.xlu0 %511 }
 0x1ea   :  { %1741 = vtanh.f32 %v406_v39  ;;  %v2256_v39 = vadd.f32 %v2144_v42, %v512_v63 }
 0x1eb   :  { %1743 = vtanh.f32 %v400_v45 }
 0x1ec   :  { %1745 = vtanh.f32 %v403_v0 }
 0x1ed   :  { %641 = vperm.xlu0 %1617, %v2176_v15  }
 0x1ef   :  { %v408_v22 = vpop.f32.mrf.mxu2 }
 0x1f0   :  { %v1742_v5 = vpop.eup %1741  ;;  %v514_v59 = vpop.xlane.xlu1 %513 }
 0x1f1   :  { %v482_v43 = vmul.f32 %v1742_v5, %v2079_v2  ;;  %v1744_v13 = vpop.eup %1743  ;;  %v2229_v21 = vadd.f32 %v2144_v42, %v514_v59 }
 0x1f2   :  { %v480_v55 = vmul.f32 %v1744_v13, %v2079_v2  ;;  %v1746_v8 = vpop.eup %1745 }
 0x1f3   :  { %v481_v25 = vmul.f32 %v1746_v8, %v2079_v2 }
 0x1f4   :  { %v548_v7 = vpop.xlane.xlu0 %547 }
 0x1f7   :  { %632 = vperm.xlu1 %1618, %v2180_v52  }
 0x1f8   :  { %v516_v44 = vpop.xlane.xlu2 %515 }
 0x1f9   :  { %v2214_v54 = vadd.f32 %v2144_v42, %v516_v44 }
 0x1fc   :  { %v2223_v17 = vpop.xlane.xlu1 %549 }
 0x1fd   :  { %v2274_v0 = vadd.f32 %v2144_v42, %v2223_v17 }
 0x1ff   :  { %638 = vperm.xlu1 %1618, %v2184_v19  }
 0x200   :  { %v618_v9 = vpop.permute.xlu2 %617 }
 0x206   :  { %v2237_v14 = vpop.xlane.xlu0 %517 }
 0x20e   :  { %v2226_v3 = vpop.xlane.xlu1 %519 }
 0x20f   :  { %527 = vadd.xlane.f32.xlu2 %v475_v33  ;;  %v409_v33 = vadd.f32 %v2072_v58, %v408_v22  ;;  %v2284_v17 = vadd.f32 %v2144_v42, %v2226_v3 }
 0x211   :  { %1747 = vtanh.f32 %v409_v33 }
 0x217   :  { %535 = vadd.xlane.f32.xlu0 %v479_v24  ;;  %v714_v24 = vperm.slane %v618_v9, %v2241_v23  ;;  %v1748_v44 = vpop.eup %1747 }
 0x218   :  { %v483_v9 = vmul.f32 %v1748_v44, %v2079_v2 }
 0x219   :  { %v621_v18 = vpop.permute.xlu0 %620 }
 0x21a   :  { %v715_v48 = vperm.slane %v621_v18, %v2241_v23 }
 0x21c   :  { %v747_v61 = vsel %vm746_vm1, %v715_v48, %v714_v24 }
 0x226   :  { %v624_v11 = vpop.permute.xlu1 %623 }
 0x227   :  { %635 = vperm.xlu2 %1616, %v2193_v30   ;;  %v716_v57 = vperm.slane %v624_v11, %v2241_v23 }
 0x229   :  { %531 = vadd.xlane.f32.xlu1 %v477_v31  ;;  %v749_v34 = vsel %vm748_vm2, %v716_v57, %v747_v61 }
 0x22b   :  { %650 = vperm.xlu0 %1617, %v2198_v32  }
 0x239   :  { %v522_v51 = vpop.xlane.xlu2 %521 }
 0x23a   :  { %v2220_v56 = vadd.f32 %v2144_v42, %v522_v51  ;;  %v2266_v51 = vadd.f32 %v2144_v42, %v548_v7 }
 0x241   :  { %v627_v60 = vpop.permute.xlu2 %626 }
 0x242   :  { %647 = vperm.xlu1 %1618, %v2202_v1   ;;  %v717_v26 = vperm.slane %v627_v60, %v2241_v23 }
 0x244   :  { %v751_v36 = vsel %vm750_vm3, %v717_v26, %v749_v34  ;;  %v524_v5 = vpop.xlane.xlu0 %523 }
 0x249   :  { %v630_v62 = vpop.permute.xlu2 %629 }
 0x24a   :  { %v718_v28 = vperm.slane %v630_v62, %v2241_v23 }
 0x24c   :  { %v753_v37 = vsel %vm752_vm4, %v718_v28, %v751_v36  ;;  %v530_v13 = vpop.xlane.xlu0 %529 }
 0x24d   :  { %v2315_v61 = vadd.f32 %v2144_v42, %v530_v13 }
 0x250   :  { %533 = vadd.xlane.f32.xlu2 %v478_v41 }
 0x251   :  { %v2239_v16 = vpop.xlane.xlu1 %525 }
 0x252   :  { %v2293_v24 = vadd.f32 %v2144_v42, %v2239_v16  ;;  %v2307_v16 = vadd.f32 %v2144_v42, %v2237_v14 }
 0x255   :  { %541 = vadd.xlane.f32.xlu0 %v482_v43 }
 0x268   :  { %644 = vperm.xlu2 %1616, %v2211_v50  }
 0x269   :  { %659 = vperm.xlu0 %1617, %v2214_v54   ;;  %v633_v20 = vpop.permute.xlu1 %632 }
 0x26a   :  { %v719_v31 = vperm.slane %v633_v20, %v2241_v23 }
 0x26c   :  { %537 = vadd.xlane.f32.xlu1 %v480_v55  ;;  %v755_v40 = vsel %vm754_vm5, %v719_v31, %v753_v37  ;;  %v642_v55 = vpop.permute.xlu0 %641 }
 0x26d   :  { %v722_v29 = vperm.slane %v642_v55, %v2241_v23 }
 0x271   :  { %668 = vperm.xlu0 %1617, %v2220_v56   ;;  %v639_v38 = vpop.permute.xlu1 %638 }
 0x272   :  { %v721_v43 = vperm.slane %v639_v38, %v2241_v23 }
 0x282   :  { %v528_v4 = vpop.xlane.xlu2 %527 }
 0x283   :  { %v2232_v6 = vadd.f32 %v2144_v42, %v528_v4  ;;  %v411_v4 = vpop.f32.mrf.mxu2 }
 0x284   :  { %v412_v8 = vadd.f32 %v2072_v58, %v411_v4 }
 0x285   :  { %656 = vperm.xlu1 %1618, %v2229_v21   ;;  %677 = vperm.xlu0 %1617, %v2232_v6  }
 0x286   :  { %1749 = vtanh.f32 %v412_v8 }
 0x28a   :  { %v636_v27 = vpop.permute.xlu2 %635  ;;  %v536_v60 = vpop.xlane.xlu0 %535 }
 0x28b   :  { %v720_v35 = vperm.slane %v636_v27, %v2241_v23  ;;  %v2323_v14 = vadd.f32 %v2144_v42, %v536_v60 }
 0x28c   :  { %v1750_v57 = vpop.eup %1749 }
 0x28d   :  { %v757_v41 = vsel %vm756_vm6, %v720_v35, %v755_v40  ;;  %v484_v3 = vmul.f32 %v1750_v57, %v2079_v2  ;;  %v2311_v2 = vadd.f32 %v2144_v42, %v524_v5 }
 0x28e   :  { %v759_v45 = vsel %vm758_vm7, %v721_v43, %v757_v41 }
 0x28f   :  { %v786_v47 = vsel %vm785_vm8, %v759_v45, -inf }
 0x291   :  { %539 = vadd.xlane.f32.xlu2 %v481_v25 }
 0x29c   :  { %v532_v59 = vpop.xlane.xlu1 %531 }
 0x29d   :  { %v651_v11 = vpop.permute.xlu0 %650  ;;  %v2298_v26 = vadd.f32 %v2144_v42, %v532_v59 }
 0x29e   :  { %v725_v22 = vperm.slane %v651_v11, %v2241_v23 }
 0x2a9   :  { %653 = vperm.xlu2 %1616, %v2256_v39  }
 0x2af   :  { %543 = vadd.xlane.f32.xlu1 %v483_v9  ;;  %787 = vmax.xlane.f32.xlu0 %v786_v47 }
 0x2b1   :  { %707 = vperm.xlu2 %1616, %v2266_v51  }
 0x2b4   :  { %v648_v7 = vpop.permute.xlu1 %647 }
 0x2b5   :  { %v724_v20 = vperm.slane %v648_v7, %v2241_v23 }
 0x2c3   :  { %v534_v62 = vpop.xlane.xlu2 %533 }
 0x2c4   :  { %v2270_v63 = vadd.f32 %v2144_v42, %v534_v62 }
 0x2c6   :  { %686 = vperm.xlu0 %1617, %v2270_v63  }
 0x2c8   :  { %710 = vperm.xlu1 %1618, %v2274_v0   ;;  %v542_v31 = vpop.xlane.xlu0 %541 }
 0x2c9   :  { %v2331_v44 = vadd.f32 %v2144_v42, %v542_v31 }
 0x2cb   :  { %v645_v25 = vpop.permute.xlu2 %644 }
 0x2cc   :  { %v723_v18 = vperm.slane %v645_v25, %v2241_v23 }
 0x2ce   :  { %v760_v48 = vsel %vm746_vm1, %v723_v18, %v722_v29 }
 0x2cf   :  { %v761_v33 = vsel %vm748_vm2, %v724_v20, %v760_v48 }
 0x2d0   :  { %665 = vperm.xlu1 %1618, %v2284_v17   ;;  %v762_v58 = vsel %vm750_vm3, %v725_v22, %v761_v33 }
 0x2d8   :  { %674 = vperm.xlu1 %1618, %v2293_v24  }
 0x2da   :  { %545 = vadd.xlane.f32.xlu2 %v484_v3 }
 0x2db   :  { %v660_v36 = vpop.permute.xlu0 %659 }
 0x2dc   :  { %v728_v5 = vperm.slane %v660_v36, %v2241_v23 }
 0x2df   :  { %v538_v27 = vpop.xlane.xlu1 %537 }
 0x2e0   :  { %683 = vperm.xlu1 %1618, %v2298_v26   ;;  %v2302_v28 = vadd.f32 %v2144_v42, %v538_v27 }
 0x2e3   :  { %v669_v47 = vpop.permute.xlu0 %668 }
 0x2e8   :  { %692 = vperm.xlu1 %1618, %v2302_v28  }
 0x2f2   :  { %662 = vperm.xlu2 %1616, %v2307_v16  }
 0x2f7   :  { %v657_v37 = vpop.permute.xlu1 %656  ;;  %v2336_v13 = vpop.permute.xlu0 %677 }
 0x2f8   :  { %v727_v41 = vperm.slane %v657_v37, %v2241_v23 }
 0x2fa   :  { %671 = vperm.xlu2 %1616, %v2311_v2  }
 0x302   :  { %680 = vperm.xlu2 %1616, %v2315_v61  }
 0x304   :  { %v540_v34 = vpop.xlane.xlu2 %539 }
 0x305   :  { %v2319_v35 = vadd.f32 %v2144_v42, %v540_v34 }
 0x307   :  { %695 = vperm.xlu0 %1617, %v2319_v35  }
 0x30a   :  { %689 = vperm.xlu2 %1616, %v2323_v14  }
 0x30c   :  { %v654_v38 = vpop.permute.xlu2 %653 }
 0x30d   :  { %v726_v40 = vperm.slane %v654_v38, %v2241_v23 }
 0x30f   :  { %v763_v43 = vsel %vm752_vm4, %v726_v40, %v762_v58 }
 0x310   :  { %v764_v45 = vsel %vm754_vm5, %v727_v41, %v763_v43 }
 0x311   :  { %v765_v9 = vsel %vm756_vm6, %v728_v5, %v764_v45 }
 0x312   :  { %698 = vperm.xlu2 %1616, %v2331_v44  }
 0x322   :  { %v544_v55 = vpop.xlane.xlu1 %543  ;;  %v2338_v59 = vpop.xlane.xlu0 %787 }
 0x323   :  { %v2341_v60 = vadd.f32 %v2144_v42, %v544_v55  ;;  %v803_v62 = vperm.slane %v2338_v59, 1  ;;  %v806_v7 = vperm.slane %v2338_v59, 4  ;;  %v809_v29 = vperm.slane %v2338_v59, 7 }
 0x324   :  { %v802_v33 = vperm.slane %v2338_v59, 0  ;;  %v805_v27 = vperm.slane %v2338_v59, 3  ;;  %v807_v40 = vperm.slane %v2338_v59, 5  ;;  %v731_v55 = vperm.slane %v669_v47, %v2241_v23 }
 0x325   :  { %701 = vperm.xlu1 %1618, %v2341_v60   ;;  %v867_v4 = vsub.f32 %v2152_v49, %v803_v62  ;;  %v870_v11 = vsub.f32 %v2172_v12, %v806_v7  ;;  %v873_v20 = vsub.f32 %v2184_v19, %v809_v29  ;;  %v2359_v12 = vpop.permute.xlu2 %707 }
 0x326   :  { %v866_v57 = vsub.f32 %v2148_v46, %v802_v33  ;;  %v869_v36 = vsub.f32 %v2167_v10, %v805_v27  ;;  %v871_v43 = vsub.f32 %v2180_v52, %v807_v40  ;;  %v734_v52 = vperm.slane %v2336_v13, %v2241_v23 }
 0x327   :  { %v900_v8 = vmul.f32 1.442695, %v867_v4  ;;  %v906_v25 = vmul.f32 1.442695, %v870_v11  ;;  %v912_v22 = vmul.f32 1.442695, %v873_v20 }
 0x328   :  { %v898_v19 = vmul.f32 1.442695, %v866_v57  ;;  %v904_v38 = vmul.f32 1.442695, %v869_v36  ;;  %v908_v4 = vmul.f32 1.442695, %v871_v43 }
 0x329   :  { %1751 = vpow2.f32 %v900_v8  ;;  %v808_v36 = vperm.slane %v2338_v59, 6 }
 0x32a   :  { %1753 = vpow2.f32 %v906_v25  ;;  %v804_v25 = vperm.slane %v2338_v59, 2 }
 0x32b   :  { %1755 = vpow2.f32 %v912_v22 }
 0x32c   :  { %1757 = vpow2.f32 %v898_v19  ;;  %v868_v22 = vsub.f32 %v2156_v53, %v804_v25 }
 0x32d   :  { %1759 = vpow2.f32 %v904_v38 }
 0x32e   :  { %1761 = vpow2.f32 %v908_v4 }
 0x32f   :  { %v2349_v18 = vpop.eup %1751 }
 0x330   :  { %998 = vperm.xlu1 %1618, %v2349_v18   ;;  %v2353_v48 = vpop.eup %1753 }
 0x331   :  { %v2356_v49 = vpop.eup %1755 }
 0x332   :  { %v2373_v46 = vpop.eup %1757 }
 0x333   :  { %v2382_v8 = vpop.eup %1759 }
 0x334   :  { %v2395_v27 = vpop.eup %1761 }
 0x338   :  { %1007 = vperm.xlu1 %1618, %v2353_v48   ;;  %v687_v57 = vpop.permute.xlu0 %686 }
 0x33a   :  { %v2362_v58 = vpop.permute.xlu1 %710 }
 0x340   :  { %1016 = vperm.xlu1 %1618, %v2356_v49  }
 0x342   :  { %v666_v34 = vpop.permute.xlu1 %665 }
 0x343   :  { %v730_v10 = vperm.slane %v666_v34, %v2241_v23  ;;  %v902_v34 = vmul.f32 1.442695, %v868_v22 }
 0x345   :  { %v767_v11 = vsel %vm746_vm1, %v731_v55, %v730_v10  ;;  %1763 = vpow2.f32 %v902_v34 }
 0x34a   :  { %v675_v45 = vpop.permute.xlu1 %674 }
 0x34b   :  { %v2406_v43 = vpop.eup %1763 }
 0x34d   :  { %v546_v3 = vpop.xlane.xlu2 %545 }
 0x34e   :  { %v2367_v31 = vadd.f32 %v2144_v42, %v546_v3 }
 0x350   :  { %704 = vperm.xlu0 %1617, %v2367_v31  }
 0x352   :  { %v684_v33 = vpop.permute.xlu1 %683 }
 0x353   :  { %v736_v13 = vperm.slane %v684_v33, %v2241_v23 }
 0x355   :  { %v663_v37 = vpop.permute.xlu2 %662 }
 0x356   :  { %v729_v41 = vperm.slane %v663_v37, %v2241_v23  ;;  %v737_v37 = vperm.slane %v687_v57, %v2241_v23  ;;  %v744_v57 = vperm.slane %v2359_v12, %v2241_v23 }
 0x358   :  { %995 = vperm.xlu0 %1617, %v2373_v46   ;;  %v766_v5 = vsel %vm758_vm7, %v729_v41, %v765_v9  ;;  %v733_v9 = vperm.slane %v675_v45, %v2241_v23 }
 0x359   :  { %v789_v42 = vsel %vm785_vm8, %v766_v5, -inf  ;;  %v872_v5 = vsub.f32 %v2193_v30, %v808_v36 }
 0x35a   :  { %790 = vmax.xlane.f32.xlu2 %v789_v42  ;;  %v693_v45 = vpop.permute.xlu1 %692 }
 0x35b   :  { %v910_v42 = vmul.f32 1.442695, %v872_v5  ;;  %v739_v30 = vperm.slane %v693_v45, %v2241_v23 }
 0x35d   :  { %v672_v62 = vpop.permute.xlu2 %671  ;;  %1765 = vpow2.f32 %v910_v42 }
 0x35e   :  { %v732_v7 = vperm.slane %v672_v62, %v2241_v23 }
 0x360   :  { %v768_v29 = vsel %vm748_vm2, %v732_v7, %v767_v11  ;;  %1004 = vperm.xlu0 %1617, %v2382_v8  }
 0x361   :  { %v769_v47 = vsel %vm750_vm3, %v733_v9, %v768_v29 }
 0x362   :  { %v770_v20 = vsel %vm752_vm4, %v734_v52, %v769_v47 }
 0x363   :  { %v2409_v59 = vpop.eup %1765 }
 0x365   :  { %v681_v3 = vpop.permute.xlu2 %680 }
 0x366   :  { %v735_v19 = vperm.slane %v681_v3, %v2241_v23 }
 0x368   :  { %v771_v38 = vsel %vm754_vm5, %v735_v19, %v770_v20  ;;  %1010 = vperm.xlu0 %1617, %v2395_v27   ;;  %v745_v19 = vperm.slane %v2362_v58, %v2241_v23 }
 0x369   :  { %v772_v53 = vsel %vm756_vm6, %v736_v13, %v771_v38 }
 0x36a   :  { %v773_v40 = vsel %vm758_vm7, %v737_v37, %v772_v53 }
 0x36b   :  { %v792_v41 = vsel %vm785_vm8, %v773_v40, -inf }
 0x36c   :  { %793 = vmax.xlane.f32.xlu1 %v792_v41 }
 0x36d   :  { %v690_v10 = vpop.permute.xlu2 %689 }
 0x36e   :  { %v738_v62 = vperm.slane %v690_v10, %v2241_v23 }
 0x370   :  { %v774_v9 = vsel %vm746_vm1, %v739_v30, %v738_v62 }
 0x372   :  { %1001 = vperm.xlu2 %1616, %v2406_v43  }
 0x375   :  { %v699_v11 = vpop.permute.xlu2 %698 }
 0x376   :  { %v741_v29 = vperm.slane %v699_v11, %v2241_v23 }
 0x379   :  { %v696_v55 = vpop.permute.xlu0 %695 }
 0x37a   :  { %1013 = vperm.xlu2 %1616, %v2409_v59   ;;  %v740_v7 = vperm.slane %v696_v55, %v2241_v23 }
 0x37c   :  { %v775_v25 = vsel %vm748_vm2, %v740_v7, %v774_v9 }
 0x37d   :  { %v776_v20 = vsel %vm750_vm3, %v741_v29, %v775_v25 }
 0x397   :  { %v702_v4 = vpop.permute.xlu1 %701 }
 0x398   :  { %v742_v52 = vperm.slane %v702_v4, %v2241_v23 }
 0x39a   :  { %v777_v3 = vsel %vm752_vm4, %v742_v52, %v776_v20 }
 0x3a2   :  { %v2420_v22 = vpop.permute.xlu1 %998 }
 0x3aa   :  { %v2432_v38 = vpop.permute.xlu1 %1007 }
 0x3b2   :  { %v2439_v9 = vpop.permute.xlu1 %1016 }
 0x3c2   :  { %v705_v47 = vpop.permute.xlu0 %704 }
 0x3c3   :  { %v743_v33 = vperm.slane %v705_v47, %v2241_v23 }
 0x3c5   :  { %v778_v13 = vsel %vm754_vm5, %v743_v33, %v777_v3 }
 0x3c6   :  { %v779_v34 = vsel %vm756_vm6, %v744_v57, %v778_v13 }
 0x3c7   :  { %v780_v36 = vsel %vm758_vm7, %v745_v19, %v779_v34 }
 0x3c8   :  { %v795_v37 = vsel %vm785_vm8, %v780_v36, -inf }
 0x3c9   :  { %796 = vmax.xlane.f32.xlu2 %v795_v37 }
 0x3cd   :  { %v791_v53 = vpop.xlane.xlu2 %790 }
 0x3ce   :  { %v810_v40 = vperm.slane %v791_v53, 0  ;;  %v812_v41 = vperm.slane %v791_v53, 2  ;;  %v811_v12 = vperm.slane %v791_v53, 1  ;;  %v813_v58 = vperm.slane %v791_v53, 3 }
 0x3cf   :  { %v815_v45 = vperm.slane %v791_v53, 5  ;;  %v814_v11 = vperm.slane %v791_v53, 4 }
 0x3d0   :  { %v874_v5 = vsub.f32 %v2176_v15, %v810_v40  ;;  %v876_v42 = vsub.f32 %v2202_v1, %v812_v41  ;;  %v875_v62 = vsub.f32 %v2211_v50, %v811_v12  ;;  %v877_v4 = vsub.f32 %v2198_v32, %v813_v58 }
 0x3d1   :  { %v879_v7 = vsub.f32 %v2229_v21, %v815_v45  ;;  %v816_v15 = vperm.slane %v791_v53, 6  ;;  %v878_v29 = vsub.f32 %v2256_v39, %v814_v11  ;;  %v817_v21 = vperm.slane %v791_v53, 7 }
 0x3d2   :  { %v914_v10 = vmul.f32 1.442695, %v874_v5  ;;  %v918_v55 = vmul.f32 1.442695, %v876_v42  ;;  %v916_v30 = vmul.f32 1.442695, %v875_v62 }
 0x3d3   :  { %v920_v25 = vmul.f32 1.442695, %v877_v4  ;;  %v924_v52 = vmul.f32 1.442695, %v879_v7  ;;  %v880_v32 = vsub.f32 %v2214_v54, %v816_v15  ;;  %v922_v50 = vmul.f32 1.442695, %v878_v29 }
 0x3d4   :  { %1767 = vpow2.f32 %v914_v10  ;;  %v881_v13 = vsub.f32 %v2307_v16, %v817_v21  ;;  %v1091_v29 = vperm.slane %v2420_v22, %v2241_v23 }
 0x3d5   :  { %1769 = vpow2.f32 %v918_v55  ;;  %v926_v57 = vmul.f32 1.442695, %v880_v32  ;;  %v996_v55 = vpop.permute.xlu0 %995 }
 0x3d6   :  { %1771 = vpow2.f32 %v916_v30  ;;  %v928_v37 = vmul.f32 1.442695, %v881_v13 }
 0x3d7   :  { %1773 = vpow2.f32 %v920_v25  ;;  %v1002_v25 = vpop.permute.xlu2 %1001 }
 0x3d8   :  { %1775 = vpow2.f32 %v924_v52  ;;  %v1092_v52 = vperm.slane %v1002_v25, %v2241_v23 }
 0x3d9   :  { %1777 = vpow2.f32 %v922_v50 }
 0x3da   :  { %v2441_v1 = vpop.eup %1767  ;;  %1779 = vpow2.f32 %v926_v57 }
 0x3db   :  { %v2444_v47 = vpop.eup %1769  ;;  %1019 = vperm.xlu0 %1617, %v2441_v1  }
 0x3dc   :  { %1025 = vperm.xlu1 %1618, %v2444_v47   ;;  %v2451_v33 = vpop.eup %1771 }
 0x3dd   :  { %v2455_v39 = vpop.eup %1773  ;;  %v1005_v11 = vpop.permute.xlu0 %1004 }
 0x3de   :  { %v2460_v34 = vpop.eup %1775  ;;  %v1093_v57 = vperm.slane %v1005_v11, %v2241_v23 }
 0x3df   :  { %v2449_v20 = vpop.xlane.xlu1 %793  ;;  %v2466_v41 = vpop.eup %1777 }
 0x3e0   :  { %v818_v3 = vperm.slane %v2449_v20, 0  ;;  %v821_v54 = vperm.slane %v2449_v20, 3  ;;  %v820_v40 = vperm.slane %v2449_v20, 2  ;;  %v824_v5 = vperm.slane %v2449_v20, 6 }
 0x3e1   :  { %1022 = vperm.xlu2 %1616, %v2451_v33   ;;  %v823_v45 = vperm.slane %v2449_v20, 5 }
 0x3e2   :  { %v882_v19 = vsub.f32 %v2284_v17, %v818_v3  ;;  %v885_v53 = vsub.f32 %v2293_v24, %v821_v54  ;;  %v2469_v17 = vpop.eup %1779  ;;  %v884_v12 = vsub.f32 %v2311_v2, %v820_v40  ;;  %v888_v58 = vsub.f32 %v2298_v26, %v824_v5  ;;  %v1014_v3 = vpop.permute.xlu2 %1013 }
 0x3e3   :  { %1028 = vperm.xlu0 %1617, %v2455_v39   ;;  %v887_v62 = vsub.f32 %v2315_v61, %v823_v45  ;;  %v1090_v61 = vperm.slane %v996_v55, %v2241_v23  ;;  %v1094_v54 = vperm.slane %v2432_v38, %v2241_v23  ;;  %v1097_v40 = vperm.slane %v2439_v9, %v2241_v23 }
 0x3e4   :  { %1034 = vperm.xlu1 %1618, %v2460_v34   ;;  %v930_v36 = vmul.f32 1.442695, %v882_v19  ;;  %v936_v16 = vmul.f32 1.442695, %v885_v53  ;;  %v934_v24 = vmul.f32 1.442695, %v884_v12 }
 0x3e5   :  { %v942_v2 = vmul.f32 1.442695, %v888_v58  ;;  %v940_v7 = vmul.f32 1.442695, %v887_v62  ;;  %v1122_v32 = vsel %vm746_vm1, %v1091_v29, %v1090_v61  ;;  %v1011_v21 = vpop.permute.xlu0 %1010  ;;  %v819_v5 = vperm.slane %v2449_v20, 1 }
 0x3e6   :  { %1781 = vpow2.f32 %v930_v36  ;;  %v1123_v50 = vsel %vm748_vm2, %v1092_v52, %v1122_v32  ;;  %v1095_v13 = vperm.slane %v1011_v21, %v2241_v23  ;;  %v1096_v36 = vperm.slane %v1014_v3, %v2241_v23 }
 0x3e7   :  { %1783 = vpow2.f32 %v928_v37  ;;  %v1124_v19 = vsel %vm750_vm3, %v1093_v57, %v1123_v50  ;;  %v883_v38 = vsub.f32 %v2220_v56, %v819_v5  ;;  %v822_v58 = vperm.slane %v2449_v20, 4 }
 0x3e8   :  { %1785 = vpow2.f32 %v936_v16  ;;  %v1125_v37 = vsel %vm752_vm4, %v1094_v54, %v1124_v19 }
 0x3e9   :  { %1031 = vperm.xlu2 %1616, %v2466_v41   ;;  %1787 = vpow2.f32 %v934_v24  ;;  %v1126_v22 = vsel %vm754_vm5, %v1095_v13, %v1125_v37  ;;  %v932_v24 = vmul.f32 1.442695, %v883_v38  ;;  %v886_v45 = vsub.f32 %v2232_v6, %v822_v58 }
 0x3ea   :  { %1789 = vpow2.f32 %v942_v2  ;;  %v1127_v53 = vsel %vm756_vm6, %v1096_v36, %v1126_v22  ;;  %v825_v2 = vperm.slane %v2449_v20, 7 }
 0x3eb   :  { %1037 = vperm.xlu0 %1617, %v2469_v17   ;;  %1791 = vpow2.f32 %v940_v7  ;;  %v1128_v16 = vsel %vm758_vm7, %v1097_v40, %v1127_v53  ;;  %v938_v55 = vmul.f32 1.442695, %v886_v45 }
 0x3ec   :  { %v2474_v42 = vpop.eup %1781  ;;  %v1154_v12 = vsel %vm785_vm8, %v1128_v16, 0.0  ;;  %1793 = vpow2.f32 %v932_v24  ;;  %v889_v9 = vsub.f32 %v2270_v63, %v825_v2 }
 0x3ed   :  { %1043 = vperm.xlu1 %1618, %v2474_v42   ;;  %v2479_v10 = vpop.eup %1783  ;;  %1795 = vpow2.f32 %v938_v55 }
 0x3ee   :  { %v2483_v4 = vpop.eup %1785  ;;  %v944_v7 = vmul.f32 1.442695, %v889_v9 }
 0x3ef   :  { %v2486_v30 = vpop.eup %1787 }
 0x3f0   :  { %v2489_v26 = vpop.eup %1789  ;;  %1797 = vpow2.f32 %v944_v7 }
 0x3f1   :  { %1040 = vperm.xlu2 %1616, %v2479_v10   ;;  %v2492_v15 = vpop.eup %1791 }
 0x3f2   :  { %v2519_v62 = vpop.eup %1793 }
 0x3f3   :  { %v2523_v11 = vpop.eup %1795 }
 0x3f5   :  { %1052 = vperm.xlu1 %1618, %v2483_v4  }
 0x3f6   :  { %v2526_v56 = vpop.eup %1797 }
 0x3f9   :  { %1049 = vperm.xlu2 %1616, %v2486_v30  }
 0x3fd   :  { %1061 = vperm.xlu1 %1618, %v2489_v26  }
 0x401   :  { %1058 = vperm.xlu2 %1616, %v2492_v15  }
 0x415   :  { %1155 = vadd.xlane.f32.xlu0 %v1154_v12 }
 0x429   :  { %1046 = vperm.xlu0 %1617, %v2519_v62  }
 0x431   :  { %1055 = vperm.xlu0 %1617, %v2523_v11  }
 0x439   :  { %1064 = vperm.xlu0 %1617, %v2526_v56  }
 0x43c   :  { %v797_v6 = vpop.xlane.xlu2 %796 }
 0x43d   :  { %v827_v25 = vperm.slane %v797_v6, 1  ;;  %v826_v20 = vperm.slane %v797_v6, 0  ;;  %v828_v61 = vperm.slane %v797_v6, 2  ;;  %v830_v32 = vperm.slane %v797_v6, 4 }
 0x43e   :  { %v829_v50 = vperm.slane %v797_v6, 3  ;;  %v831_v21 = vperm.slane %v797_v6, 5  ;;  %v833_v37 = vperm.slane %v797_v6, 7  ;;  %v832_v22 = vperm.slane %v797_v6, 6 }
 0x43f   :  { %v891_v52 = vsub.f32 %v2302_v28, %v827_v25  ;;  %v890_v29 = vsub.f32 %v2323_v14, %v826_v20  ;;  %v892_v63 = vsub.f32 %v2319_v35, %v828_v61  ;;  %v894_v13 = vsub.f32 %v2341_v60, %v830_v32 }
 0x440   :  { %v893_v54 = vsub.f32 %v2331_v44, %v829_v50  ;;  %v895_v36 = vsub.f32 %v2367_v31, %v831_v21  ;;  %v897_v44 = vsub.f32 %v2274_v0, %v833_v37  ;;  %v896_v60 = vsub.f32 %v2266_v51, %v832_v22 }
 0x441   :  { %v948_v57 = vmul.f32 1.442695, %v891_v52  ;;  %v946_v3 = vmul.f32 1.442695, %v890_v29  ;;  %v950_v19 = vmul.f32 1.442695, %v892_v63 }
 0x442   :  { %v954_v28 = vmul.f32 1.442695, %v894_v13  ;;  %v952_v14 = vmul.f32 1.442695, %v893_v54  ;;  %v956_v53 = vmul.f32 1.442695, %v895_v36 }
 0x443   :  { %1799 = vpow2.f32 %v948_v57  ;;  %v960_v31 = vmul.f32 1.442695, %v897_v44  ;;  %v958_v12 = vmul.f32 1.442695, %v896_v60 }
 0x444   :  { %1801 = vpow2.f32 %v946_v3  ;;  %v1023_v45 = vpop.permute.xlu2 %1022 }
 0x445   :  { %1803 = vpow2.f32 %v950_v19  ;;  %v1099_v7 = vperm.slane %v1023_v45, %v2241_v23 }
 0x446   :  { %1805 = vpow2.f32 %v954_v28 }
 0x447   :  { %1807 = vpow2.f32 %v952_v14 }
 0x448   :  { %1809 = vpow2.f32 %v956_v53 }
 0x449   :  { %v2535_v35 = vpop.eup %1799  ;;  %1811 = vpow2.f32 %v960_v31 }
 0x44a   :  { %v2537_v40 = vpop.eup %1801  ;;  %1070 = vperm.xlu1 %1618, %v2535_v35   ;;  %1813 = vpow2.f32 %v958_v12 }
 0x44b   :  { %v2540_v16 = vpop.eup %1803  ;;  %1067 = vperm.xlu2 %1616, %v2537_v40  }
 0x44c   :  { %1073 = vperm.xlu0 %1617, %v2540_v16   ;;  %v2546_v5 = vpop.eup %1805  ;;  %v1032_v6 = vpop.permute.xlu2 %1031 }
 0x44d   :  { %v2548_v38 = vpop.eup %1807  ;;  %v1020_v58 = vpop.permute.xlu0 %1019  ;;  %v1102_v32 = vperm.slane %v1032_v6, %v2241_v23 }
 0x44e   :  { %v2551_v24 = vpop.eup %1809  ;;  %v1026_v2 = vpop.permute.xlu1 %1025  ;;  %v1098_v9 = vperm.slane %v1020_v58, %v2241_v23 }
 0x44f   :  { %v2555_v0 = vpop.eup %1811  ;;  %v1100_v25 = vperm.slane %v1026_v2, %v2241_v23 }
 0x450   :  { %v2557_v51 = vpop.eup %1813  ;;  %v1129_v20 = vsel %vm746_vm1, %v1099_v7, %v1098_v9 }
 0x451   :  { %v1130_v52 = vsel %vm748_vm2, %v1100_v25, %v1129_v20 }
 0x452   :  { %1079 = vperm.xlu1 %1618, %v2546_v5  }
 0x453   :  { %1076 = vperm.xlu2 %1616, %v2548_v38  }
 0x454   :  { %1082 = vperm.xlu0 %1617, %v2551_v24   ;;  %v1041_v19 = vpop.permute.xlu2 %1040 }
 0x455   :  { %v1029_v55 = vpop.permute.xlu0 %1028  ;;  %v1105_v36 = vperm.slane %v1041_v19, %v2241_v23 }
 0x456   :  { %v1101_v61 = vperm.slane %v1029_v55, %v2241_v23  ;;  %v1035_v50 = vpop.permute.xlu1 %1034 }
 0x457   :  { %v1103_v3 = vperm.slane %v1035_v50, %v2241_v23 }
 0x458   :  { %v1131_v29 = vsel %vm750_vm3, %v1101_v61, %v1130_v52 }
 0x459   :  { %v1132_v21 = vsel %vm752_vm4, %v1102_v32, %v1131_v29 }
 0x45a   :  { %1088 = vperm.xlu1 %1618, %v2555_v0   ;;  %v1133_v13 = vsel %vm754_vm5, %v1103_v3, %v1132_v21 }
 0x45b   :  { %1085 = vperm.xlu2 %1616, %v2557_v51  }
 0x45c   :  { %v1050_v25 = vpop.permute.xlu2 %1049 }
 0x45d   :  { %v1038_v63 = vpop.permute.xlu0 %1037  ;;  %v1108_v3 = vperm.slane %v1050_v25, %v2241_v23 }
 0x45e   :  { %v1104_v57 = vperm.slane %v1038_v63, %v2241_v23 }
 0x45f   :  { %v1044_v31 = vpop.permute.xlu1 %1043 }
 0x460   :  { %v1134_v54 = vsel %vm756_vm6, %v1104_v57, %v1133_v13  ;;  %v1106_v63 = vperm.slane %v1044_v31, %v2241_v23 }
 0x461   :  { %v1135_v28 = vsel %vm758_vm7, %v1105_v36, %v1134_v54 }
 0x462   :  { %v1157_v37 = vsel %vm785_vm8, %v1135_v28, 0.0 }
 0x464   :  { %v1059_v28 = vpop.permute.xlu2 %1058 }
 0x467   :  { %v1053_v32 = vpop.permute.xlu1 %1052 }
 0x484   :  { %1158 = vadd.xlane.f32.xlu2 %v1157_v37 }
 0x488   :  { %v1156_v14 = vpop.xlane.xlu0 %1155 }
 0x489   :  { %1815 = vrcp.f32 %v1156_v14  ;;  %v1177_v60 = vand.u32 2147483648, %v1156_v14  ;;  %v1175_v58 = vand.u32 2147483647, %v1156_v14  ;;  %vm1171_vm10 = vweird.f32 %v1156_v14 }
 0x48b   :  { %v1178_v55 = vor.u32 1.1754944e-38, %v1177_v60  ;;  %vm1176_vm12 = vcmp.eq.f32.partialorder %v1175_v58, 8.507059e+37 }
 0x48f   :  { %v1816_v22 = vpop.eup %1815 }
 0x490   :  { %v1167_v53 = vmul.f32 %v1816_v22, %v1156_v14  ;;  %vm1172_vm9 = vweird.f32 %v1816_v22 }
 0x491   :  { %vm1173_vm11 = vmor %vm1171_vm10, %vm1172_vm9  ;;  %vm1465_vm9 = vcmask 326912   ;;  %vm1469_vm10 = vcmask 392512  }
 0x492   :  { %v1168_v44 = vsub.f32 1.0, %v1167_v53  ;;  %v1062_v53 = vpop.permute.xlu1 %1061 }
 0x494   :  { %v1169_v12 = vmul.f32 %v1816_v22, %v1168_v44 }
 0x496   :  { %v1170_v45 = vadd.f32 %v1816_v22, %v1169_v12 }
 0x498   :  { %v1174_v2 = vsel %vm1173_vm11, %v1816_v22, %v1170_v45  ;;  %v1111_v22 = vperm.slane %v1059_v28, %v2241_v23  ;;  %vm1473_vm11 = vcmask 458112  }
 0x499   :  { %v2577_v9 = vsel %vm1176_vm12, %v1178_v55, %v1174_v2  ;;  %vm1477_vm12 = vcmask 523712  }
 0x49a   :  { %v1228_v7 = vperm.slane %v2577_v9, 2  ;;  %v1226_v6 = vperm.slane %v2577_v9, 0  ;;  %v1230_v21 = vperm.slane %v2577_v9, 4  ;;  %v1229_v57 = vperm.slane %v2577_v9, 3 }
 0x49b   :  { %v1047_v20 = vpop.permute.xlu0 %1046  ;;  %v1233_v44 = vperm.slane %v2577_v9, 7  ;;  %v1232_v60 = vperm.slane %v2577_v9, 6 }
 0x49c   :  { %v1107_v61 = vperm.slane %v1047_v20, %v2241_v23  ;;  %v1292_v52 = vmul.f32 %v2406_v43, %v1228_v7  ;;  %v1290_v29 = vmul.f32 %v2373_v46, %v1226_v6  ;;  %v1109_v43 = vperm.slane %v1053_v32, %v2241_v23 }
 0x49d   :  { %v1294_v54 = vmul.f32 %v2353_v48, %v1230_v21  ;;  %v1293_v36 = vmul.f32 %v2382_v8, %v1229_v57  ;;  %v1112_v48 = vperm.slane %v1062_v53, %v2241_v23  ;;  %v1297_v58 = vmul.f32 %v2356_v49, %v1233_v44 }
 0x49e   :  { %1361 = vperm.xlu0 %1617, %v1292_v52   ;;  %1355 = vperm.xlu2 %1616, %v1290_v29   ;;  %v1136_v50 = vsel %vm746_vm1, %v1107_v61, %v1106_v63  ;;  %v1296_v45 = vmul.f32 %v2409_v59, %v1232_v60  ;;  %v1227_v52 = vperm.slane %v2577_v9, 1 }
 0x49f   :  { %v1137_v19 = vsel %vm748_vm2, %v1108_v3, %v1136_v50 }
 0x4a0   :  { %v1138_v37 = vsel %vm750_vm3, %v1109_v43, %v1137_v19  ;;  %v1291_v50 = vmul.f32 %v2349_v18, %v1227_v52 }
 0x4a3   :  { %v1056_v13 = vpop.permute.xlu0 %1055 }
 0x4a4   :  { %v1110_v46 = vperm.slane %v1056_v13, %v2241_v23  ;;  %v1231_v13 = vperm.slane %v2577_v9, 5 }
 0x4a5   :  { %v1068_v6 = vpop.permute.xlu2 %1067 }
 0x4a6   :  { %1367 = vperm.xlu0 %1617, %v1294_v54   ;;  %1364 = vperm.xlu2 %1616, %v1293_v36   ;;  %v1139_v14 = vsel %vm752_vm4, %v1110_v46, %v1138_v37  ;;  %v1114_v49 = vperm.slane %v1068_v6, %v2241_v23  ;;  %v1295_v18 = vmul.f32 %v2395_v27, %v1231_v13 }
 0x4a7   :  { %v1140_v31 = vsel %vm754_vm5, %v1111_v22, %v1139_v14 }
 0x4a8   :  { %v1141_v55 = vsel %vm756_vm6, %v1112_v48, %v1140_v31 }
 0x4ab   :  { %v1065_v12 = vpop.permute.xlu0 %1064 }
 0x4ac   :  { %v1113_v8 = vperm.slane %v1065_v12, %v2241_v23 }
 0x4ad   :  { %v1077_v29 = vpop.permute.xlu2 %1076 }
 0x4ae   :  { %1376 = vperm.xlu0 %1617, %v1297_v58   ;;  %1373 = vperm.xlu2 %1616, %v1296_v45   ;;  %v1142_v2 = vsel %vm758_vm7, %v1113_v8, %v1141_v55  ;;  %v1117_v19 = vperm.slane %v1077_v29, %v2241_v23 }
 0x4af   :  { %v1160_v7 = vsel %vm785_vm8, %v1142_v2, 0.0 }
 0x4b0   :  { %1161 = vadd.xlane.f32.xlu1 %v1160_v7 }
 0x4b5   :  { %v1086_v28 = vpop.permute.xlu2 %1085 }
 0x4b6   :  { %v1120_v22 = vperm.slane %v1086_v28, %v2241_v23 }
 0x4bc   :  { %v1071_v25 = vpop.permute.xlu1 %1070 }
 0x4bd   :  { %v1115_v61 = vperm.slane %v1071_v25, %v2241_v23 }
 0x4be   :  { %v1074_v20 = vpop.permute.xlu0 %1073 }
 0x4bf   :  { %v1116_v63 = vperm.slane %v1074_v20, %v2241_v23  ;;  %v1143_v32 = vsel %vm746_vm1, %v1115_v61, %v1114_v49 }
 0x4c1   :  { %v1144_v21 = vsel %vm748_vm2, %v1116_v63, %v1143_v32 }
 0x4c2   :  { %v1145_v43 = vsel %vm750_vm3, %v1117_v19, %v1144_v21 }
 0x4c4   :  { %v1080_v59 = vpop.permute.xlu1 %1079 }
 0x4c5   :  { %v1118_v57 = vperm.slane %v1080_v59, %v2241_v23 }
 0x4c6   :  { %v1083_v3 = vpop.permute.xlu0 %1082 }
 0x4c7   :  { %v1119_v46 = vperm.slane %v1083_v3, %v2241_v23  ;;  %v1146_v54 = vsel %vm752_vm4, %v1118_v57, %v1145_v43 }
 0x4c9   :  { %1358 = vperm.xlu1 %1618, %v1291_v50   ;;  %v1147_v37 = vsel %vm754_vm5, %v1119_v46, %v1146_v54 }
 0x4ca   :  { %v1148_v53 = vsel %vm756_vm6, %v1120_v22, %v1147_v37  ;;  %vm1453_vm6 = vcmask 130112  }
 0x4cc   :  { %v1089_v36 = vpop.permute.xlu1 %1088 }
 0x4cd   :  { %v1121_v14 = vperm.slane %v1089_v36, %v2241_v23 }
 0x4cf   :  { %v1149_v9 = vsel %vm758_vm7, %v1121_v14, %v1148_v53  ;;  %vm1457_vm7 = vcmask 195712  }
 0x4d0   :  { %v1163_v44 = vsel %vm785_vm8, %v1149_v9, 0.0  ;;  %vm1461_vm8 = vcmask 261312  }
 0x4d1   :  { %1370 = vperm.xlu1 %1618, %v1295_v18  }
 0x4d8   :  { %1164 = vadd.xlane.f32.xlu0 %v1163_v44 }
 0x4f7   :  { %v1159_v60 = vpop.xlane.xlu2 %1158 }
 0x4f8   :  { %1817 = vrcp.f32 %v1159_v60  ;;  %v1191_v27 = vand.u32 2147483648, %v1159_v60  ;;  %v1189_v58 = vand.u32 2147483647, %v1159_v60  ;;  %vm1185_vm14 = vweird.f32 %v1159_v60 }
 0x4fa   :  { %v1192_v55 = vor.u32 1.1754944e-38, %v1191_v27  ;;  %vm1190_vm0 = vcmp.eq.f32.partialorder %v1189_v58, 8.507059e+37 }
 0x4fe   :  { %v1818_v31 = vpop.eup %1817 }
 0x4ff   :  { %v1181_v48 = vmul.f32 %v1818_v31, %v1159_v60  ;;  %vm1186_vm13 = vweird.f32 %v1818_v31  ;;  %v1356_v43 = vpop.permute.xlu2 %1355  ;;  %v2639_v60 = vadd.s32 4294967288, %v2241_v23 }
 0x500   :  { %vm1187_vm15 = vmor %vm1185_vm14, %vm1186_vm13 }
 0x501   :  { %v1182_v12 = vsub.f32 1.0, %v1181_v48 }
 0x503   :  { %v1183_v8 = vmul.f32 %v1818_v31, %v1182_v12  ;;  %v2645_v12 = vadd.s32 4294967272, %v2241_v23 }
 0x505   :  { %v1184_v45 = vadd.f32 %v1818_v31, %v1183_v8  ;;  %v1450_v8 = vperm.slane %v1356_v43, %v2241_v23 }
 0x507   :  { %v1188_v2 = vsel %vm1187_vm15, %v1818_v31, %v1184_v45  ;;  %v1365_v44 = vpop.permute.xlu2 %1364  ;;  %v2642_v31 = vadd.s32 4294967280, %v2241_v23 }
 0x508   :  { %v1193_v7 = vsel %vm1190_vm0, %v1192_v55, %v1188_v2  ;;  %v1460_v2 = vperm.slane %v1365_v44, %v2645_v12 }
 0x509   :  { %v1235_v6 = vperm.slane %v1193_v7, 1  ;;  %v1234_v25 = vperm.slane %v1193_v7, 0  ;;  %v1236_v20 = vperm.slane %v1193_v7, 2  ;;  %v1238_v29 = vperm.slane %v1193_v7, 4 }
 0x50a   :  { %v1237_v59 = vperm.slane %v1193_v7, 3  ;;  %v1239_v63 = vperm.slane %v1193_v7, 5  ;;  %v1240_v57 = vperm.slane %v1193_v7, 6 }
 0x50b   :  { %v1299_v61 = vmul.f32 %v2451_v33, %v1235_v6  ;;  %v1298_v52 = vmul.f32 %v2441_v1, %v1234_v25  ;;  %v1300_v49 = vmul.f32 %v2444_v47, %v1236_v20  ;;  %v1302_v32 = vmul.f32 %v2466_v41, %v1238_v29 }
 0x50c   :  { %v1301_v50 = vmul.f32 %v2455_v39, %v1237_v59  ;;  %v1303_v21 = vmul.f32 %v2460_v34, %v1239_v63  ;;  %v1241_v33 = vperm.slane %v1193_v7, 7  ;;  %v1304_v47 = vmul.f32 %v2469_v17, %v1240_v57 }
 0x50d   :  { %1382 = vperm.xlu2 %1616, %v1299_v61   ;;  %1379 = vperm.xlu1 %1618, %v1298_v52   ;;  %v2665_v59 = vadd.s32 4294967248, %v2241_v23 }
 0x50e   :  { %1385 = vperm.xlu0 %1617, %v1300_v49   ;;  %v1305_v1 = vmul.f32 %v2479_v10, %v1241_v33  ;;  %v2661_v49 = vadd.s32 4294967256, %v2241_v23 }
 0x510   :  { %v1362_v46 = vpop.permute.xlu0 %1361 }
 0x511   :  { %v1456_v55 = vperm.slane %v1362_v46, %v2642_v31 }
 0x515   :  { %1391 = vperm.xlu2 %1616, %v1302_v32   ;;  %1388 = vperm.xlu1 %1618, %v1301_v50   ;;  %v1374_v32 = vpop.permute.xlu2 %1373  ;;  %v2669_v50 = vadd.s32 4294967240, %v2241_v23 }
 0x516   :  { %1394 = vperm.xlu0 %1617, %v1303_v21   ;;  %v1472_v57 = vperm.slane %v1374_v32, %v2665_v59 }
 0x518   :  { %v1368_v48 = vpop.permute.xlu0 %1367 }
 0x51d   :  { %1400 = vperm.xlu2 %1616, %v1305_v1   ;;  %1397 = vperm.xlu1 %1618, %v1304_v47  }
 0x523   :  { %v1162_v3 = vpop.xlane.xlu1 %1161 }
 0x524   :  { %1819 = vrcp.f32 %v1162_v3  ;;  %v1205_v39 = vand.u32 2147483648, %v1162_v3  ;;  %v1203_v54 = vand.u32 2147483647, %v1162_v3  ;;  %vm1199_vm3 = vweird.f32 %v1162_v3 }
 0x526   :  { %v1206_v28 = vor.u32 1.1754944e-38, %v1205_v39  ;;  %vm1204_vm5 = vcmp.eq.f32.partialorder %v1203_v54, 8.507059e+37 }
 0x52a   :  { %v1820_v19 = vpop.eup %1819 }
 0x52b   :  { %v1195_v13 = vmul.f32 %v1820_v19, %v1162_v3  ;;  %vm1200_vm2 = vweird.f32 %v1820_v19 }
 0x52c   :  { %vm1201_vm4 = vmor %vm1199_vm3, %vm1200_vm2  ;;  %vm1481_vm2 = vcmask 589312   ;;  %vm1485_vm3 = vcmask 654912  }
 0x52d   :  { %v1196_v41 = vsub.f32 1.0, %v1195_v13 }
 0x52f   :  { %v1197_v34 = vmul.f32 %v1820_v19, %v1196_v41 }
 0x531   :  { %v1198_v36 = vadd.f32 %v1820_v19, %v1197_v34 }
 0x533   :  { %v1202_v10 = vsel %vm1201_vm4, %v1820_v19, %v1198_v36  ;;  %vm1489_vm4 = vcmask 720512  }
 0x534   :  { %v1207_v17 = vsel %vm1204_vm5, %v1206_v28, %v1202_v10  ;;  %vm1493_vm5 = vcmask 786112  }
 0x535   :  { %v1244_v18 = vperm.slane %v1207_v17, 2  ;;  %v1243_v37 = vperm.slane %v1207_v17, 1  ;;  %v1242_v14 = vperm.slane %v1207_v17, 0  ;;  %v1246_v27 = vperm.slane %v1207_v17, 4 }
 0x536   :  { %v1245_v45 = vperm.slane %v1207_v17, 3  ;;  %v1248_v33 = vperm.slane %v1207_v17, 6 }
 0x537   :  { %v1308_v22 = vmul.f32 %v2486_v30, %v1244_v18  ;;  %v1307_v53 = vmul.f32 %v2519_v62, %v1243_v37  ;;  %v1306_v9 = vmul.f32 %v2474_v42, %v1242_v14  ;;  %v2648_v30 = vadd.s32 4294967264, %v2241_v23 }
 0x538   :  { %v1247_v42 = vperm.slane %v1207_v17, 5  ;;  %v1310_v61 = vmul.f32 %v2523_v11, %v1246_v27  ;;  %v1309_v52 = vmul.f32 %v2483_v4, %v1245_v45  ;;  %v1249_v11 = vperm.slane %v1207_v17, 7 }
 0x539   :  { %1409 = vperm.xlu2 %1616, %v1308_v22   ;;  %1406 = vperm.xlu1 %1618, %v1307_v53   ;;  %v1464_v6 = vperm.slane %v1368_v48, %v2648_v30  ;;  %v1312_v13 = vmul.f32 %v2489_v26, %v1248_v33 }
 0x53a   :  { %1403 = vperm.xlu0 %1617, %v1306_v9   ;;  %v1311_v20 = vmul.f32 %v2492_v15, %v1247_v42  ;;  %v1377_v15 = vpop.permute.xlu0 %1376  ;;  %v1313_v19 = vmul.f32 %v2526_v56, %v1249_v11 }
 0x53b   :  { %v1359_v62 = vpop.permute.xlu1 %1358  ;;  %v1476_v1 = vperm.slane %v1377_v15, %v2669_v50 }
 0x53c   :  { %v1452_v58 = vperm.slane %v1359_v62, %v2639_v60 }
 0x53e   :  { %v1454_v7 = vsel %vm1453_vm6, %v1452_v58, %v1450_v8 }
 0x53f   :  { %v1458_v25 = vsel %vm1457_vm7, %v1456_v55, %v1454_v7 }
 0x540   :  { %v1462_v29 = vsel %vm1461_vm8, %v1460_v2, %v1458_v25 }
 0x541   :  { %1418 = vperm.xlu2 %1616, %v1311_v20   ;;  %1415 = vperm.xlu1 %1618, %v1310_v61   ;;  %v1466_v63 = vsel %vm1465_vm9, %v1464_v6, %v1462_v29 }
 0x542   :  { %1412 = vperm.xlu0 %1617, %v1309_v52  }
 0x543   :  { %v1371_v4 = vpop.permute.xlu1 %1370 }
 0x544   :  { %v1468_v21 = vperm.slane %v1371_v4, %v2661_v49 }
 0x546   :  { %v1470_v47 = vsel %vm1469_vm10, %v1468_v21, %v1466_v63 }
 0x547   :  { %v1474_v3 = vsel %vm1473_vm11, %v1472_v57, %v1470_v47 }
 0x548   :  { %v2679_v41 = vsel %vm1477_vm12, %v1476_v1, %v1474_v3 }
 0x549   :  { %1424 = vperm.xlu1 %1618, %v1313_v19  }
 0x54a   :  { %1421 = vperm.xlu0 %1617, %v1312_v13  }
 0x54b   :  { %v1165_v43 = vpop.xlane.xlu0 %1164 }
 0x54c   :  { %1821 = vrcp.f32 %v1165_v43  ;;  %v1219_v54 = vand.u32 2147483648, %v1165_v43  ;;  %v1217_v28 = vand.u32 2147483647, %v1165_v43  ;;  %vm1213_vm14 = vweird.f32 %v1165_v43 }
 0x54e   :  { %v1220_v56 = vor.u32 1.1754944e-38, %v1219_v54  ;;  %vm1218_vm0 = vcmp.eq.f32.partialorder %v1217_v28, 8.507059e+37  ;;  %v1491_v54 = vadd.s32 4294967208, %v2241_v23 }
 0x552   :  { %v1822_v39 = vpop.eup %1821 }
 0x553   :  { %v1209_v46 = vmul.f32 %v1822_v39, %v1165_v43  ;;  %vm1214_vm13 = vweird.f32 %v1822_v39 }
 0x554   :  { %vm1215_vm15 = vmor %vm1213_vm14, %vm1214_vm13 }
 0x555   :  { %v1210_v34 = vsub.f32 1.0, %v1209_v46 }
 0x557   :  { %v1211_v36 = vmul.f32 %v1822_v39, %v1210_v34 }
 0x559   :  { %v1212_v10 = vadd.f32 %v1822_v39, %v1211_v36 }
 0x55b   :  { %v1216_v17 = vsel %vm1215_vm15, %v1822_v39, %v1212_v10  ;;  %v1483_v39 = vadd.s32 4294967224, %v2241_v23 }
 0x55c   :  { %v1221_v26 = vsel %vm1218_vm0, %v1220_v56, %v1216_v17 }
 0x55d   :  { %v1252_v18 = vperm.slane %v1221_v26, 2  ;;  %v1251_v37 = vperm.slane %v1221_v26, 1  ;;  %v1250_v14 = vperm.slane %v1221_v26, 0  ;;  %v1255_v44 = vperm.slane %v1221_v26, 5 }
 0x55e   :  { %v1254_v48 = vperm.slane %v1221_v26, 4  ;;  %v1253_v62 = vperm.slane %v1221_v26, 3  ;;  %v1256_v58 = vperm.slane %v1221_v26, 6 }
 0x55f   :  { %v1316_v22 = vmul.f32 %v2540_v16, %v1252_v18  ;;  %v1315_v53 = vmul.f32 %v2535_v35, %v1251_v37  ;;  %v1314_v9 = vmul.f32 %v2537_v40, %v1250_v14  ;;  %v1319_v42 = vmul.f32 %v2551_v24, %v1255_v44 }
 0x560   :  { %v1318_v27 = vmul.f32 %v2546_v5, %v1254_v48  ;;  %v1317_v8 = vmul.f32 %v2548_v38, %v1253_v62  ;;  %v1257_v16 = vperm.slane %v1221_v26, 7  ;;  %v1320_v40 = vmul.f32 %v2557_v51, %v1256_v58 }
 0x561   :  { %1433 = vperm.xlu1 %1618, %v1316_v22   ;;  %1430 = vperm.xlu0 %1617, %v1315_v53   ;;  %v1495_v22 = vadd.s32 4294967200, %v2241_v23 }
 0x562   :  { %1427 = vperm.xlu2 %1616, %v1314_v9   ;;  %v1321_v35 = vmul.f32 %v2555_v0, %v1257_v16 }
 0x567   :  { %v1383_v55 = vpop.permute.xlu2 %1382 }
 0x568   :  { %v1484_v10 = vperm.slane %v1383_v55, %v1483_v39 }
 0x569   :  { %1442 = vperm.xlu1 %1618, %v1319_v42   ;;  %1439 = vperm.xlu0 %1617, %v1318_v27   ;;  %v1499_v27 = vadd.s32 4294967192, %v2241_v23 }
 0x56a   :  { %1436 = vperm.xlu2 %1616, %v1317_v8  }
 0x56f   :  { %v2689_v24 = vpop.permute.xlu2 %1391 }
 0x570   :  { %v1496_v58 = vperm.slane %v2689_v24, %v1495_v22 }
 0x571   :  { %1448 = vperm.xlu0 %1617, %v1321_v35  }
 0x572   :  { %1445 = vperm.xlu2 %1616, %v1320_v40  }
 0x577   :  { %v2695_v6 = vpop.permute.xlu2 %1400 }
 0x57f   :  { %v1380_v45 = vpop.permute.xlu1 %1379 }
 0x580   :  { %v1386_v2 = vpop.permute.xlu0 %1385 }
 0x587   :  { %v1389_v7 = vpop.permute.xlu1 %1388 }
 0x588   :  { %v2691_v5 = vpop.permute.xlu0 %1394  ;;  %v1492_v37 = vperm.slane %v1389_v7, %v1491_v54  ;;  %v1507_v7 = vadd.s32 4294967176, %v2241_v23 }
 0x58a   :  { %v1508_v24 = vperm.slane %v2695_v6, %v1507_v7 }
 0x58f   :  { %v2693_v38 = vpop.permute.xlu1 %1397 }
 0x593   :  { %v1410_v61 = vpop.permute.xlu2 %1409 }
 0x594   :  { %v1514_v4 = vperm.slane %v1410_v61, %v2642_v31 }
 0x59b   :  { %v1419_v63 = vpop.permute.xlu2 %1418 }
 0x59c   :  { %v1520_v13 = vperm.slane %v1419_v63, %v2661_v49  ;;  %v1487_v49 = vadd.s32 4294967216, %v2241_v23 }
 0x59e   :  { %v1488_v53 = vperm.slane %v1386_v2, %v1487_v49 }
 0x5ab   :  { %v1407_v20 = vpop.permute.xlu1 %1406 }
 0x5ac   :  { %v1404_v25 = vpop.permute.xlu0 %1403  ;;  %v1512_v51 = vperm.slane %v1407_v20, %v2639_v60  ;;  %v1479_v60 = vadd.s32 4294967232, %v2241_v23 }
 0x5ad   :  { %v1511_v29 = vperm.slane %v1404_v25, %v2241_v23  ;;  %v1500_v25 = vperm.slane %v2691_v5, %v1499_v27 }
 0x5af   :  { %v1513_v32 = vsel %vm1453_vm6, %v1512_v51, %v1511_v29  ;;  %vm1497_vm6 = vcmask 851712  }
 0x5b0   :  { %v1515_v21 = vsel %vm1457_vm7, %v1514_v4, %v1513_v32  ;;  %vm1501_vm7 = vcmask 917312  }
 0x5b3   :  { %v1416_v52 = vpop.permute.xlu1 %1415 }
 0x5b4   :  { %v1413_v0 = vpop.permute.xlu0 %1412  ;;  %v1518_v11 = vperm.slane %v1416_v52, %v2648_v30  ;;  %v1480_v30 = vperm.slane %v1380_v45, %v1479_v60 }
 0x5b5   :  { %v1516_v15 = vperm.slane %v1413_v0, %v2645_v12 }
 0x5b7   :  { %v1517_v33 = vsel %vm1461_vm8, %v1516_v15, %v1515_v21  ;;  %vm1505_vm8 = vcmask 982912  }
 0x5b8   :  { %v1519_v3 = vsel %vm1465_vm9, %v1518_v11, %v1517_v33  ;;  %vm1509_vm9 = vcmask 1048512  }
 0x5b9   :  { %v1521_v31 = vsel %vm1469_vm10, %v1520_v13, %v1519_v3 }
 0x5bb   :  { %v1425_v1 = vpop.permute.xlu1 %1424 }
 0x5bc   :  { %v1422_v57 = vpop.permute.xlu0 %1421  ;;  %v1428_v47 = vpop.permute.xlu2 %1427  ;;  %v1524_v12 = vperm.slane %v1425_v1, %v2669_v50 }
 0x5bd   :  { %v1522_v19 = vperm.slane %v1422_v57, %v2665_v59  ;;  %v1482_v59 = vsel %vm1481_vm2, %v1480_v30, %v2679_v41  ;;  %v1526_v50 = vperm.slane %v1428_v47, %v1479_v60  ;;  %v1503_v41 = vadd.s32 4294967184, %v2241_v23 }
 0x5be   :  { %v1486_v18 = vsel %vm1485_vm3, %v1484_v10, %v1482_v59 }
 0x5bf   :  { %v1523_v43 = vsel %vm1473_vm11, %v1522_v19, %v1521_v31  ;;  %v1490_v9 = vsel %vm1489_vm4, %v1488_v53, %v1486_v18  ;;  %v1504_v55 = vperm.slane %v2693_v38, %v1503_v41 }
 0x5c0   :  { %v1525_v36 = vsel %vm1477_vm12, %v1524_v12, %v1523_v43  ;;  %v1494_v42 = vsel %vm1493_vm5, %v1492_v37, %v1490_v9 }
 0x5c1   :  { %v1527_v26 = vsel %vm1481_vm2, %v1526_v50, %v1525_v36  ;;  %v1498_v45 = vsel %vm1497_vm6, %v1496_v58, %v1494_v42 }
 0x5c2   :  { %v1502_v61 = vsel %vm1501_vm7, %v1500_v25, %v1498_v45 }
 0x5c3   :  { %v1506_v52 = vsel %vm1505_vm8, %v1504_v55, %v1502_v61 }
 0x5c4   :  { %v1437_v56 = vpop.permute.xlu2 %1436  ;;  %v1510_v15 = vsel %vm1509_vm9, %v1508_v24, %v1506_v52 }
 0x5c5   :  { %v1532_v8 = vperm.slane %v1437_v56, %v1491_v54 }
 0x5cc   :  { %v1446_v20 = vpop.permute.xlu2 %1445 }
 0x5cd   :  { %v1538_v51 = vperm.slane %v1446_v20, %v1503_v41 }
 0x5d3   :  { %v1434_v46 = vpop.permute.xlu1 %1433  ;;  %v1431_v34 = vpop.permute.xlu0 %1430 }
 0x5d4   :  { %v1528_v28 = vperm.slane %v1431_v34, %v1483_v39  ;;  %v1530_v17 = vperm.slane %v1434_v46, %v1487_v49 }
 0x5d6   :  { %v1529_v14 = vsel %vm1485_vm3, %v1528_v28, %v1527_v26 }
 0x5d7   :  { %v1531_v44 = vsel %vm1489_vm4, %v1530_v17, %v1529_v14 }
 0x5d8   :  { %v1533_v40 = vsel %vm1493_vm5, %v1532_v8, %v1531_v44 }
 0x5db   :  { %v1443_v48 = vpop.permute.xlu1 %1442  ;;  %v1440_v62 = vpop.permute.xlu0 %1439 }
 0x5dc   :  { %v1534_v16 = vperm.slane %v1440_v62, %v1495_v22  ;;  %v1536_v35 = vperm.slane %v1443_v48, %v1499_v27 }
 0x5de   :  { %v1535_v2 = vsel %vm1497_vm6, %v1534_v16, %v1533_v40 }
 0x5df   :  { %v1537_v0 = vsel %vm1501_vm7, %v1536_v35, %v1535_v2 }
 0x5e0   :  { %v1539_v32 = vsel %vm1505_vm8, %v1538_v51, %v1537_v0 }
 0x5e3   :  { %v1449_v29 = vpop.permute.xlu0 %1448 }
 0x5e4   :  { %v1540_v63 = vperm.slane %v1449_v29, %v1507_v7 }
 0x5e6   :  { %v1541_v4 = vsel %vm1509_vm9, %v1540_v63, %v1539_v32 }
 0x5e7   :  { %v1542_v38 = vsel %vm746_vm1, %v1541_v4, %v1510_v15 }
 0x5e8   :  { %1544 = vst [vmem:[%s2731_s2] sm:$0x3] %v1542_v38 }

</bundles_post_ra>
